<compile_context>
chip_gen: v7x
topology: tpu7x:2x2x1
jax: 0.10.0
libtpu: 0.0.40
codegen_flags: <defaults>
</compile_context>

<pallas_src>
import functools

import jax
import jax.numpy as jnp
from jax.experimental import pallas as pl
from jax.experimental.pallas import tpu as pltpu


def _vmem_specs(n):
    return [pl.BlockSpec(memory_space=pltpu.MemorySpace.VMEM) for _ in range(n)]


def _softmax_lastdim(s):
    """Numerically-stable softmax; reciprocal on the EUP (approx vrcp)."""
    m = jnp.max(s, axis=-1, keepdims=True)
    e = jnp.exp(s - m)
    return e * pl.reciprocal(jnp.sum(e, axis=-1, keepdims=True), approx=True)


# --------------------------------------------------------------------------
# Fused kernel: QFM (masked LSTM) + MFG + QGA + RWG
# --------------------------------------------------------------------------
def vqac_kernel(x_ref, qlen_ref,
                wih_ref, whh_ref, blstm_ref,
                ft_ref, ft1_ref, res_ref,
                wm_ref, bm_ref,
                wv_ref, wq_ref, wa_ref,
                wr_ref,
                wfgs_ref, wfgm_ref, wffr_ref, wffw_ref, bf_ref,
                wo_ref, bo_ref,
                out_ref):
    TB, E = x_ref.shape
    H = whh_ref.shape[0]
    B, N, D = ft_ref.shape
    T = TB // B

    # ---------------- QFM: masked LSTM question encoder ----------------
    # Input projection hoisted out of the recurrence: one (T*B,E)@(E,4H)
    # MXU matmul instead of T matmuls on the serial critical path.
    xg = (jnp.dot(x_ref[...], wih_ref[...],
                  preferred_element_type=jnp.float32) + blstm_ref[...])
    whh = whh_ref[...]
    qlen = qlen_ref[...]                       # (B, 1) f32 question lengths

    h = jnp.zeros((B, H), jnp.float32)
    c = jnp.zeros((B, H), jnp.float32)
    # T is a small compile-time constant: fully unrolled so adjacent steps'
    # recurrent matmul / EUP / VPU work can interleave.
    for t in range(T):
        gates = xg[t * B:(t + 1) * B] + jnp.dot(
            h, whh, preferred_element_type=jnp.float32)
        sig = jax.nn.sigmoid(gates)            # full-width EUP ops, slice after
        th = jnp.tanh(gates)
        i = sig[:, 0:H]
        f = sig[:, H:2 * H]
        g = th[:, 2 * H:3 * H]
        o = sig[:, 3 * H:4 * H]
        c_new = f * c + i * g
        h_new = o * jnp.tanh(c_new)
        valid = jnp.float32(t) < qlen          # (B, 1), broadcasts over H
        h = jnp.where(valid, h_new, h)
        c = jnp.where(valid, c_new, c)
    e_q = h                                    # encoded question  E_q
    f_w = c                                    # batch_state[1]

    # ---------------- MFG: motion feature ----------------
    ft = ft_ref[...]
    ft2d = ft.reshape(B * N, D)
    diff2d = ft2d - ft1_ref[...].reshape(B * N, D)
    fm2d = jnp.tanh(jnp.dot(diff2d, wm_ref[...],
                            preferred_element_type=jnp.float32) + bm_ref[...])
    fm = fm2d.reshape(B, N, D)                 # in-kernel temporary only

    # ---------------- QGA: fused appearance + motion attention ----------------
    # [ft | fm] @ block_diag(W_v_s, W_v_m): one MXU push, 2H-wide result.
    feats = jnp.concatenate([ft2d, fm2d], axis=-1)                     # (B*N, 2D)
    fproj = jnp.dot(feats, wv_ref[...],
                    preferred_element_type=jnp.float32)                # (B*N, 2H)
    qproj = jnp.dot(e_q, wq_ref[...],
                    preferred_element_type=jnp.float32)                # (B, 2H)
    u = jnp.tanh(fproj.reshape(B, N, 2 * H) + qproj[:, None, :])       # (B, N, 2H)
    # Scores via VPU multiply + lane (XLU) reduce — no lane-width-1 matmuls.
    prod = u * wa_ref[...]                                             # (1,2H) bcast
    score_s = jnp.sum(prod[:, :, 0:H], axis=-1)                        # (B, N)
    score_m = jnp.sum(prod[:, :, H:2 * H], axis=-1)                    # (B, N)
    alpha_s = _softmax_lastdim(score_s)
    alpha_m = _softmax_lastdim(score_m)
    g_s = jnp.sum(alpha_s[:, :, None] * ft, axis=1)                    # (B, D)
    g_m = jnp.sum(alpha_m[:, :, None] * fm, axis=1)                    # (B, D)

    # ---------------- RWG: residue-weighted vector + answer head ----------------
    res = res_ref[...]
    score_r = jnp.sum(res * wr_ref[...], axis=-1)                      # (B, N)
    beta = _softmax_lastdim(score_r)
    f_r = jnp.sum(beta[:, :, None] * res, axis=1)                      # (B, D)

    # Concat fusion realized as a sum of partial matmuls against pre-split W_f
    # row blocks (no 4-way lane concatenation).
    dec = jnp.tanh(
        jnp.dot(g_s, wfgs_ref[...], preferred_element_type=jnp.float32)
        + jnp.dot(g_m, wfgm_ref[...], preferred_element_type=jnp.float32)
        + jnp.dot(f_r, wffr_ref[...], preferred_element_type=jnp.float32)
        + jnp.dot(f_w, wffw_ref[...], preferred_element_type=jnp.float32)
        + bf_ref[...])
    out_ref[...] = (jnp.dot(dec, wo_ref[...],
                            preferred_element_type=jnp.float32) + bo_ref[...])


# --------------------------------------------------------------------------
# Parameters (deterministic, synthetic — no checkpoint load)
# --------------------------------------------------------------------------
def init_params(key, vocab_size, text_embed, hidden, input_size, answer_size):
    V, E, H, D, A = vocab_size, text_embed, hidden, input_size, answer_size
    keys = jax.random.split(key, 13)
    s = 0.05
    f32 = jnp.float32
    return {
        'word_matrix': jax.random.normal(keys[0], (V, E), f32) * s,
        'w_ih': jax.random.normal(keys[1], (E, 4 * H), f32) * s,
        'w_hh': jax.random.normal(keys[2], (H, 4 * H), f32) * s,
        'b_lstm': jnp.zeros((1, 4 * H), f32),
        'w_m': jax.random.normal(keys[3], (D, D), f32) * s,
        'b_m': jnp.zeros((1, D), f32),
        'w_v_s': jax.random.normal(keys[4], (D, H), f32) * s,
        'w_q_s': jax.random.normal(keys[5], (H, H), f32) * s,
        'w_a_s': jax.random.normal(keys[6], (H, 1), f32) * s,
        'w_v_m': jax.random.normal(keys[7], (D, H), f32) * s,
        'w_q_m': jax.random.normal(keys[8], (H, H), f32) * s,
        'w_a_m': jax.random.normal(keys[9], (H, 1), f32) * s,
        'w_r': jax.random.normal(keys[10], (D, 1), f32) * s,
        'w_f': jax.random.normal(keys[11], (3 * D + H, H), f32) * s,
        'b_f': jnp.zeros((1, H), f32),
        'w_out': jax.random.normal(keys[12], (H, A), f32) * s,
        'b_out': jnp.zeros((1, A), f32),
    }


def pack_params(p, input_size, hidden):
    """One-time weight re-layout so the kernel can fuse MXU pushes."""
    D, H = input_size, hidden
    z = jnp.zeros((D, H), jnp.float32)
    wv_blk = jnp.concatenate(
        [jnp.concatenate([p['w_v_s'], z], axis=1),
         jnp.concatenate([z, p['w_v_m']], axis=1)], axis=0)        # (2D, 2H)
    wq_cat = jnp.concatenate([p['w_q_s'], p['w_q_m']], axis=1)     # (H, 2H)
    wa_cat = jnp.concatenate([p['w_a_s'].T, p['w_a_m'].T], axis=1)  # (1, 2H)
    wr_row = p['w_r'].T                                            # (1, D)
    wf = p['w_f']
    out = dict(p)
    out.update({
        'wv_blk': wv_blk, 'wq_cat': wq_cat, 'wa_cat': wa_cat, 'wr_row': wr_row,
        'wf_gs': wf[0:D], 'wf_gm': wf[D:2 * D],
        'wf_fr': wf[2 * D:3 * D], 'wf_fw': wf[3 * D:],
    })
    return out


# --------------------------------------------------------------------------
# Full forward (mirrors VQAC.forward, model_mode != 'HME')
# --------------------------------------------------------------------------
def vqac_forward(params, f_t, f_t_1, residue, qa, qa_len):
    B, T = qa.shape
    A = params['w_out'].shape[1]

    # Glue: embedding gather + time-major flatten; per-batch lengths only
    # (validity mask is built in-kernel — no (T, B, H) mask materialization).
    x_emb = jnp.transpose(params['word_matrix'][qa], (1, 0, 2)).reshape(
        T * B, -1)                                                 # (T*B, E)
    qlen = qa_len.astype(jnp.float32).reshape(B, 1)

    outputs = pl.pallas_call(
        vqac_kernel,
        out_shape=jax.ShapeDtypeStruct((B, A), jnp.float32),
        in_specs=_vmem_specs(21),
        out_specs=pl.BlockSpec(memory_space=pltpu.MemorySpace.VMEM),
    )(x_emb, qlen,
      params['w_ih'], params['w_hh'], params['b_lstm'],
      f_t, f_t_1, residue,
      params['w_m'], params['b_m'],
      params['wv_blk'], params['wq_cat'], params['wa_cat'],
      params['wr_row'],
      params['wf_gs'], params['wf_gm'], params['wf_fr'], params['wf_fw'],
      params['b_f'],
      params['w_out'], params['b_out'])

    predictions = jnp.argmax(outputs, axis=-1)                     # glue
    return outputs, predictions


if __name__ == "__main__":
    B, T = 2, 8                 # batch, question length
    V, E, H = 64, 32, 32        # vocab_size, text_embed_size, hidden_size
    N, D, A = 8, 32, 8          # input_number, input_size, answer_size

    key = jax.random.PRNGKey(0)
    pk, k1, k2, k3, k4 = jax.random.split(key, 5)
    params = pack_params(init_params(pk, V, E, H, D, A), D, H)

    f_t = jax.random.normal(k1, (B, N, D), jnp.float32)
    f_t_1 = jax.random.normal(k2, (B, N, D), jnp.float32)
    residue = jax.random.normal(k3, (B, N, D), jnp.float32)
    qa = jax.random.randint(k4, (B, T), 0, V, dtype=jnp.int32)
    qa_len = jnp.array([T, T - 3], dtype=jnp.int32)

    fwd = jax.jit(functools.partial(vqac_forward, params))
    outputs, predictions = fwd(f_t, f_t_1, residue, qa, qa_len)
    jax.block_until_ready((outputs, predictions))

    assert outputs.shape == (B, A)
    assert predictions.shape == (B,)
    print("KERNEL_OK")
</pallas_src>

<mosaic_0001>
module attributes {stable_mosaic.version = 11 : i64} {
  func.func @vqac_kernel(%arg0: memref<16x32xf32, #tpu.memory_space<vmem>>, %arg1: memref<2x1xf32, #tpu.memory_space<vmem>>, %arg2: memref<32x128xf32, #tpu.memory_space<vmem>>, %arg3: memref<32x128xf32, #tpu.memory_space<vmem>>, %arg4: memref<1x128xf32, #tpu.memory_space<vmem>>, %arg5: memref<2x8x32xf32, #tpu.memory_space<vmem>>, %arg6: memref<2x8x32xf32, #tpu.memory_space<vmem>>, %arg7: memref<2x8x32xf32, #tpu.memory_space<vmem>>, %arg8: memref<32x32xf32, #tpu.memory_space<vmem>>, %arg9: memref<1x32xf32, #tpu.memory_space<vmem>>, %arg10: memref<64x64xf32, #tpu.memory_space<vmem>>, %arg11: memref<32x64xf32, #tpu.memory_space<vmem>>, %arg12: memref<1x64xf32, #tpu.memory_space<vmem>>, %arg13: memref<1x32xf32, #tpu.memory_space<vmem>>, %arg14: memref<32x32xf32, #tpu.memory_space<vmem>>, %arg15: memref<32x32xf32, #tpu.memory_space<vmem>>, %arg16: memref<32x32xf32, #tpu.memory_space<vmem>>, %arg17: memref<32x32xf32, #tpu.memory_space<vmem>>, %arg18: memref<1x32xf32, #tpu.memory_space<vmem>>, %arg19: memref<32x8xf32, #tpu.memory_space<vmem>>, %arg20: memref<1x8xf32, #tpu.memory_space<vmem>>, %arg21: memref<2x8xf32, #tpu.memory_space<vmem>>) attributes {dimension_semantics = [], scalar_prefetch = 0 : i64, scratch_operands = 0 : i64, tpu.core_type = #tpu.core_type<tc>} {
    %c0 = arith.constant 0 : index
    %c0_0 = arith.constant 0 : index
    %0 = vector.load %arg0[%c0, %c0_0] : memref<16x32xf32, #tpu.memory_space<vmem>>, vector<16x32xf32>
    %c0_1 = arith.constant 0 : index
    %c0_2 = arith.constant 0 : index
    %1 = vector.load %arg2[%c0_1, %c0_2] : memref<32x128xf32, #tpu.memory_space<vmem>>, vector<32x128xf32>
    %cst = arith.constant dense<0.000000e+00> : vector<16x128xf32>
    %2 = tpu.matmul %0, %1, %cst {dimension_numbers = #tpu.dot_dimension_numbers<[1], [0], [0], [1], [0, 0, 1, 1], [], []>} : vector<16x32xf32>, vector<32x128xf32>, vector<16x128xf32> -> vector<16x128xf32>
    %c0_3 = arith.constant 0 : index
    %c0_4 = arith.constant 0 : index
    %3 = vector.load %arg4[%c0_3, %c0_4] : memref<1x128xf32, #tpu.memory_space<vmem>>, vector<1x128xf32>
    %4 = vector.broadcast %3 : vector<1x128xf32> to vector<16x128xf32>
    %5 = arith.addf %2, %4 : vector<16x128xf32>
    %c0_5 = arith.constant 0 : index
    %c0_6 = arith.constant 0 : index
    %6 = vector.load %arg3[%c0_5, %c0_6] : memref<32x128xf32, #tpu.memory_space<vmem>>, vector<32x128xf32>
    %c0_7 = arith.constant 0 : index
    %c0_8 = arith.constant 0 : index
    %7 = vector.load %arg1[%c0_7, %c0_8] : memref<2x1xf32, #tpu.memory_space<vmem>>, vector<2x1xf32>
    %cst_9 = arith.constant 0.000000e+00 : f32
    %8 = vector.broadcast %cst_9 : f32 to vector<2x32xf32>
    %cst_10 = arith.constant 0.000000e+00 : f32
    %9 = vector.broadcast %cst_10 : f32 to vector<2x32xf32>
    %10 = vector.extract_strided_slice %5 {offsets = [0, 0], sizes = [2, 128], strides = [1, 1]} : vector<16x128xf32> to vector<2x128xf32>
    %cst_11 = arith.constant dense<0.000000e+00> : vector<2x128xf32>
    %11 = tpu.matmul %8, %6, %cst_11 {dimension_numbers = #tpu.dot_dimension_numbers<[1], [0], [0], [1], [0, 0, 1, 1], [], []>} : vector<2x32xf32>, vector<32x128xf32>, vector<2x128xf32> -> vector<2x128xf32>
    %12 = arith.addf %10, %11 : vector<2x128xf32>
    %13 = arith.negf %12 : vector<2x128xf32>
    %14 = math.exp %13 : vector<2x128xf32>
    %cst_12 = arith.constant 1.000000e+00 : f32
    %15 = vector.broadcast %cst_12 : f32 to vector<2x128xf32>
    %16 = arith.addf %15, %14 : vector<2x128xf32>
    %17 = arith.divf %15, %16 : vector<2x128xf32>
    %18 = math.tanh %12 : vector<2x128xf32>
    %19 = vector.extract_strided_slice %17 {offsets = [0, 0], sizes = [2, 32], strides = [1, 1]} : vector<2x128xf32> to vector<2x32xf32>
    %20 = vector.extract_strided_slice %17 {offsets = [0, 32], sizes = [2, 32], strides = [1, 1]} : vector<2x128xf32> to vector<2x32xf32>
    %21 = vector.extract_strided_slice %18 {offsets = [0, 64], sizes = [2, 32], strides = [1, 1]} : vector<2x128xf32> to vector<2x32xf32>
    %22 = vector.extract_strided_slice %17 {offsets = [0, 96], sizes = [2, 32], strides = [1, 1]} : vector<2x128xf32> to vector<2x32xf32>
    %23 = arith.mulf %20, %9 : vector<2x32xf32>
    %24 = arith.mulf %19, %21 : vector<2x32xf32>
    %25 = arith.addf %23, %24 : vector<2x32xf32>
    %26 = math.tanh %25 : vector<2x32xf32>
    %27 = arith.mulf %22, %26 : vector<2x32xf32>
    %cst_13 = arith.constant 0.000000e+00 : f32
    %28 = vector.broadcast %cst_13 : f32 to vector<2x1xf32>
    %29 = arith.cmpf olt, %28, %7 : vector<2x1xf32>
    %30 = vector.shape_cast %29 : vector<2x1xi1> to vector<2x1xi1>
    %31 = vector.broadcast %30 : vector<2x1xi1> to vector<2x32xi1>
    %32 = arith.select %31, %27, %8 : vector<2x32xi1>, vector<2x32xf32>
    %33 = vector.shape_cast %29 : vector<2x1xi1> to vector<2x1xi1>
    %34 = vector.broadcast %33 : vector<2x1xi1> to vector<2x32xi1>
    %35 = arith.select %34, %25, %9 : vector<2x32xi1>, vector<2x32xf32>
    %36 = vector.extract_strided_slice %5 {offsets = [2, 0], sizes = [2, 128], strides = [1, 1]} : vector<16x128xf32> to vector<2x128xf32>
    %cst_14 = arith.constant dense<0.000000e+00> : vector<2x128xf32>
    %37 = tpu.matmul %32, %6, %cst_14 {dimension_numbers = #tpu.dot_dimension_numbers<[1], [0], [0], [1], [0, 0, 1, 1], [], []>} : vector<2x32xf32>, vector<32x128xf32>, vector<2x128xf32> -> vector<2x128xf32>
    %38 = arith.addf %36, %37 : vector<2x128xf32>
    %39 = arith.negf %38 : vector<2x128xf32>
    %40 = math.exp %39 : vector<2x128xf32>
    %cst_15 = arith.constant 1.000000e+00 : f32
    %41 = vector.broadcast %cst_15 : f32 to vector<2x128xf32>
    %42 = arith.addf %41, %40 : vector<2x128xf32>
    %43 = arith.divf %41, %42 : vector<2x128xf32>
    %44 = math.tanh %38 : vector<2x128xf32>
    %45 = vector.extract_strided_slice %43 {offsets = [0, 0], sizes = [2, 32], strides = [1, 1]} : vector<2x128xf32> to vector<2x32xf32>
    %46 = vector.extract_strided_slice %43 {offsets = [0, 32], sizes = [2, 32], strides = [1, 1]} : vector<2x128xf32> to vector<2x32xf32>
    %47 = vector.extract_strided_slice %44 {offsets = [0, 64], sizes = [2, 32], strides = [1, 1]} : vector<2x128xf32> to vector<2x32xf32>
    %48 = vector.extract_strided_slice %43 {offsets = [0, 96], sizes = [2, 32], strides = [1, 1]} : vector<2x128xf32> to vector<2x32xf32>
    %49 = arith.mulf %46, %35 : vector<2x32xf32>
    %50 = arith.mulf %45, %47 : vector<2x32xf32>
    %51 = arith.addf %49, %50 : vector<2x32xf32>
    %52 = math.tanh %51 : vector<2x32xf32>
    %53 = arith.mulf %48, %52 : vector<2x32xf32>
    %cst_16 = arith.constant 1.000000e+00 : f32
    %54 = vector.broadcast %cst_16 : f32 to vector<2x1xf32>
    %55 = arith.cmpf olt, %54, %7 : vector<2x1xf32>
    %56 = vector.shape_cast %55 : vector<2x1xi1> to vector<2x1xi1>
    %57 = vector.broadcast %56 : vector<2x1xi1> to vector<2x32xi1>
    %58 = arith.select %57, %53, %32 : vector<2x32xi1>, vector<2x32xf32>
    %59 = vector.shape_cast %55 : vector<2x1xi1> to vector<2x1xi1>
    %60 = vector.broadcast %59 : vector<2x1xi1> to vector<2x32xi1>
    %61 = arith.select %60, %51, %35 : vector<2x32xi1>, vector<2x32xf32>
    %62 = vector.extract_strided_slice %5 {offsets = [4, 0], sizes = [2, 128], strides = [1, 1]} : vector<16x128xf32> to vector<2x128xf32>
    %cst_17 = arith.constant dense<0.000000e+00> : vector<2x128xf32>
    %63 = tpu.matmul %58, %6, %cst_17 {dimension_numbers = #tpu.dot_dimension_numbers<[1], [0], [0], [1], [0, 0, 1, 1], [], []>} : vector<2x32xf32>, vector<32x128xf32>, vector<2x128xf32> -> vector<2x128xf32>
    %64 = arith.addf %62, %63 : vector<2x128xf32>
    %65 = arith.negf %64 : vector<2x128xf32>
    %66 = math.exp %65 : vector<2x128xf32>
    %cst_18 = arith.constant 1.000000e+00 : f32
    %67 = vector.broadcast %cst_18 : f32 to vector<2x128xf32>
    %68 = arith.addf %67, %66 : vector<2x128xf32>
    %69 = arith.divf %67, %68 : vector<2x128xf32>
    %70 = math.tanh %64 : vector<2x128xf32>
    %71 = vector.extract_strided_slice %69 {offsets = [0, 0], sizes = [2, 32], strides = [1, 1]} : vector<2x128xf32> to vector<2x32xf32>
    %72 = vector.extract_strided_slice %69 {offsets = [0, 32], sizes = [2, 32], strides = [1, 1]} : vector<2x128xf32> to vector<2x32xf32>
    %73 = vector.extract_strided_slice %70 {offsets = [0, 64], sizes = [2, 32], strides = [1, 1]} : vector<2x128xf32> to vector<2x32xf32>
    %74 = vector.extract_strided_slice %69 {offsets = [0, 96], sizes = [2, 32], strides = [1, 1]} : vector<2x128xf32> to vector<2x32xf32>
    %75 = arith.mulf %72, %61 : vector<2x32xf32>
    %76 = arith.mulf %71, %73 : vector<2x32xf32>
    %77 = arith.addf %75, %76 : vector<2x32xf32>
    %78 = math.tanh %77 : vector<2x32xf32>
    %79 = arith.mulf %74, %78 : vector<2x32xf32>
    %cst_19 = arith.constant 2.000000e+00 : f32
    %80 = vector.broadcast %cst_19 : f32 to vector<2x1xf32>
    %81 = arith.cmpf olt, %80, %7 : vector<2x1xf32>
    %82 = vector.shape_cast %81 : vector<2x1xi1> to vector<2x1xi1>
    %83 = vector.broadcast %82 : vector<2x1xi1> to vector<2x32xi1>
    %84 = arith.select %83, %79, %58 : vector<2x32xi1>, vector<2x32xf32>
    %85 = vector.shape_cast %81 : vector<2x1xi1> to vector<2x1xi1>
    %86 = vector.broadcast %85 : vector<2x1xi1> to vector<2x32xi1>
    %87 = arith.select %86, %77, %61 : vector<2x32xi1>, vector<2x32xf32>
    %88 = vector.extract_strided_slice %5 {offsets = [6, 0], sizes = [2, 128], strides = [1, 1]} : vector<16x128xf32> to vector<2x128xf32>
    %cst_20 = arith.constant dense<0.000000e+00> : vector<2x128xf32>
    %89 = tpu.matmul %84, %6, %cst_20 {dimension_numbers = #tpu.dot_dimension_numbers<[1], [0], [0], [1], [0, 0, 1, 1], [], []>} : vector<2x32xf32>, vector<32x128xf32>, vector<2x128xf32> -> vector<2x128xf32>
    %90 = arith.addf %88, %89 : vector<2x128xf32>
    %91 = arith.negf %90 : vector<2x128xf32>
    %92 = math.exp %91 : vector<2x128xf32>
    %cst_21 = arith.constant 1.000000e+00 : f32
    %93 = vector.broadcast %cst_21 : f32 to vector<2x128xf32>
    %94 = arith.addf %93, %92 : vector<2x128xf32>
    %95 = arith.divf %93, %94 : vector<2x128xf32>
    %96 = math.tanh %90 : vector<2x128xf32>
    %97 = vector.extract_strided_slice %95 {offsets = [0, 0], sizes = [2, 32], strides = [1, 1]} : vector<2x128xf32> to vector<2x32xf32>
    %98 = vector.extract_strided_slice %95 {offsets = [0, 32], sizes = [2, 32], strides = [1, 1]} : vector<2x128xf32> to vector<2x32xf32>
    %99 = vector.extract_strided_slice %96 {offsets = [0, 64], sizes = [2, 32], strides = [1, 1]} : vector<2x128xf32> to vector<2x32xf32>
    %100 = vector.extract_strided_slice %95 {offsets = [0, 96], sizes = [2, 32], strides = [1, 1]} : vector<2x128xf32> to vector<2x32xf32>
    %101 = arith.mulf %98, %87 : vector<2x32xf32>
    %102 = arith.mulf %97, %99 : vector<2x32xf32>
    %103 = arith.addf %101, %102 : vector<2x32xf32>
    %104 = math.tanh %103 : vector<2x32xf32>
    %105 = arith.mulf %100, %104 : vector<2x32xf32>
    %cst_22 = arith.constant 3.000000e+00 : f32
    %106 = vector.broadcast %cst_22 : f32 to vector<2x1xf32>
    %107 = arith.cmpf olt, %106, %7 : vector<2x1xf32>
    %108 = vector.shape_cast %107 : vector<2x1xi1> to vector<2x1xi1>
    %109 = vector.broadcast %108 : vector<2x1xi1> to vector<2x32xi1>
    %110 = arith.select %109, %105, %84 : vector<2x32xi1>, vector<2x32xf32>
    %111 = vector.shape_cast %107 : vector<2x1xi1> to vector<2x1xi1>
    %112 = vector.broadcast %111 : vector<2x1xi1> to vector<2x32xi1>
    %113 = arith.select %112, %103, %87 : vector<2x32xi1>, vector<2x32xf32>
    %114 = vector.extract_strided_slice %5 {offsets = [8, 0], sizes = [2, 128], strides = [1, 1]} : vector<16x128xf32> to vector<2x128xf32>
    %cst_23 = arith.constant dense<0.000000e+00> : vector<2x128xf32>
    %115 = tpu.matmul %110, %6, %cst_23 {dimension_numbers = #tpu.dot_dimension_numbers<[1], [0], [0], [1], [0, 0, 1, 1], [], []>} : vector<2x32xf32>, vector<32x128xf32>, vector<2x128xf32> -> vector<2x128xf32>
    %116 = arith.addf %114, %115 : vector<2x128xf32>
    %117 = arith.negf %116 : vector<2x128xf32>
    %118 = math.exp %117 : vector<2x128xf32>
    %cst_24 = arith.constant 1.000000e+00 : f32
    %119 = vector.broadcast %cst_24 : f32 to vector<2x128xf32>
    %120 = arith.addf %119, %118 : vector<2x128xf32>
    %121 = arith.divf %119, %120 : vector<2x128xf32>
    %122 = math.tanh %116 : vector<2x128xf32>
    %123 = vector.extract_strided_slice %121 {offsets = [0, 0], sizes = [2, 32], strides = [1, 1]} : vector<2x128xf32> to vector<2x32xf32>
    %124 = vector.extract_strided_slice %121 {offsets = [0, 32], sizes = [2, 32], strides = [1, 1]} : vector<2x128xf32> to vector<2x32xf32>
    %125 = vector.extract_strided_slice %122 {offsets = [0, 64], sizes = [2, 32], strides = [1, 1]} : vector<2x128xf32> to vector<2x32xf32>
    %126 = vector.extract_strided_slice %121 {offsets = [0, 96], sizes = [2, 32], strides = [1, 1]} : vector<2x128xf32> to vector<2x32xf32>
    %127 = arith.mulf %124, %113 : vector<2x32xf32>
    %128 = arith.mulf %123, %125 : vector<2x32xf32>
    %129 = arith.addf %127, %128 : vector<2x32xf32>
    %130 = math.tanh %129 : vector<2x32xf32>
    %131 = arith.mulf %126, %130 : vector<2x32xf32>
    %cst_25 = arith.constant 4.000000e+00 : f32
    %132 = vector.broadcast %cst_25 : f32 to vector<2x1xf32>
    %133 = arith.cmpf olt, %132, %7 : vector<2x1xf32>
    %134 = vector.shape_cast %133 : vector<2x1xi1> to vector<2x1xi1>
    %135 = vector.broadcast %134 : vector<2x1xi1> to vector<2x32xi1>
    %136 = arith.select %135, %131, %110 : vector<2x32xi1>, vector<2x32xf32>
    %137 = vector.shape_cast %133 : vector<2x1xi1> to vector<2x1xi1>
    %138 = vector.broadcast %137 : vector<2x1xi1> to vector<2x32xi1>
    %139 = arith.select %138, %129, %113 : vector<2x32xi1>, vector<2x32xf32>
    %140 = vector.extract_strided_slice %5 {offsets = [10, 0], sizes = [2, 128], strides = [1, 1]} : vector<16x128xf32> to vector<2x128xf32>
    %cst_26 = arith.constant dense<0.000000e+00> : vector<2x128xf32>
    %141 = tpu.matmul %136, %6, %cst_26 {dimension_numbers = #tpu.dot_dimension_numbers<[1], [0], [0], [1], [0, 0, 1, 1], [], []>} : vector<2x32xf32>, vector<32x128xf32>, vector<2x128xf32> -> vector<2x128xf32>
    %142 = arith.addf %140, %141 : vector<2x128xf32>
    %143 = arith.negf %142 : vector<2x128xf32>
    %144 = math.exp %143 : vector<2x128xf32>
    %cst_27 = arith.constant 1.000000e+00 : f32
    %145 = vector.broadcast %cst_27 : f32 to vector<2x128xf32>
    %146 = arith.addf %145, %144 : vector<2x128xf32>
    %147 = arith.divf %145, %146 : vector<2x128xf32>
    %148 = math.tanh %142 : vector<2x128xf32>
    %149 = vector.extract_strided_slice %147 {offsets = [0, 0], sizes = [2, 32], strides = [1, 1]} : vector<2x128xf32> to vector<2x32xf32>
    %150 = vector.extract_strided_slice %147 {offsets = [0, 32], sizes = [2, 32], strides = [1, 1]} : vector<2x128xf32> to vector<2x32xf32>
    %151 = vector.extract_strided_slice %148 {offsets = [0, 64], sizes = [2, 32], strides = [1, 1]} : vector<2x128xf32> to vector<2x32xf32>
    %152 = vector.extract_strided_slice %147 {offsets = [0, 96], sizes = [2, 32], strides = [1, 1]} : vector<2x128xf32> to vector<2x32xf32>
    %153 = arith.mulf %150, %139 : vector<2x32xf32>
    %154 = arith.mulf %149, %151 : vector<2x32xf32>
    %155 = arith.addf %153, %154 : vector<2x32xf32>
    %156 = math.tanh %155 : vector<2x32xf32>
    %157 = arith.mulf %152, %156 : vector<2x32xf32>
    %cst_28 = arith.constant 5.000000e+00 : f32
    %158 = vector.broadcast %cst_28 : f32 to vector<2x1xf32>
    %159 = arith.cmpf olt, %158, %7 : vector<2x1xf32>
    %160 = vector.shape_cast %159 : vector<2x1xi1> to vector<2x1xi1>
    %161 = vector.broadcast %160 : vector<2x1xi1> to vector<2x32xi1>
    %162 = arith.select %161, %157, %136 : vector<2x32xi1>, vector<2x32xf32>
    %163 = vector.shape_cast %159 : vector<2x1xi1> to vector<2x1xi1>
    %164 = vector.broadcast %163 : vector<2x1xi1> to vector<2x32xi1>
    %165 = arith.select %164, %155, %139 : vector<2x32xi1>, vector<2x32xf32>
    %166 = vector.extract_strided_slice %5 {offsets = [12, 0], sizes = [2, 128], strides = [1, 1]} : vector<16x128xf32> to vector<2x128xf32>
    %cst_29 = arith.constant dense<0.000000e+00> : vector<2x128xf32>
    %167 = tpu.matmul %162, %6, %cst_29 {dimension_numbers = #tpu.dot_dimension_numbers<[1], [0], [0], [1], [0, 0, 1, 1], [], []>} : vector<2x32xf32>, vector<32x128xf32>, vector<2x128xf32> -> vector<2x128xf32>
    %168 = arith.addf %166, %167 : vector<2x128xf32>
    %169 = arith.negf %168 : vector<2x128xf32>
    %170 = math.exp %169 : vector<2x128xf32>
    %cst_30 = arith.constant 1.000000e+00 : f32
    %171 = vector.broadcast %cst_30 : f32 to vector<2x128xf32>
    %172 = arith.addf %171, %170 : vector<2x128xf32>
    %173 = arith.divf %171, %172 : vector<2x128xf32>
    %174 = math.tanh %168 : vector<2x128xf32>
    %175 = vector.extract_strided_slice %173 {offsets = [0, 0], sizes = [2, 32], strides = [1, 1]} : vector<2x128xf32> to vector<2x32xf32>
    %176 = vector.extract_strided_slice %173 {offsets = [0, 32], sizes = [2, 32], strides = [1, 1]} : vector<2x128xf32> to vector<2x32xf32>
    %177 = vector.extract_strided_slice %174 {offsets = [0, 64], sizes = [2, 32], strides = [1, 1]} : vector<2x128xf32> to vector<2x32xf32>
    %178 = vector.extract_strided_slice %173 {offsets = [0, 96], sizes = [2, 32], strides = [1, 1]} : vector<2x128xf32> to vector<2x32xf32>
    %179 = arith.mulf %176, %165 : vector<2x32xf32>
    %180 = arith.mulf %175, %177 : vector<2x32xf32>
    %181 = arith.addf %179, %180 : vector<2x32xf32>
    %182 = math.tanh %181 : vector<2x32xf32>
    %183 = arith.mulf %178, %182 : vector<2x32xf32>
    %cst_31 = arith.constant 6.000000e+00 : f32
    %184 = vector.broadcast %cst_31 : f32 to vector<2x1xf32>
    %185 = arith.cmpf olt, %184, %7 : vector<2x1xf32>
    %186 = vector.shape_cast %185 : vector<2x1xi1> to vector<2x1xi1>
    %187 = vector.broadcast %186 : vector<2x1xi1> to vector<2x32xi1>
    %188 = arith.select %187, %183, %162 : vector<2x32xi1>, vector<2x32xf32>
    %189 = vector.shape_cast %185 : vector<2x1xi1> to vector<2x1xi1>
    %190 = vector.broadcast %189 : vector<2x1xi1> to vector<2x32xi1>
    %191 = arith.select %190, %181, %165 : vector<2x32xi1>, vector<2x32xf32>
    %192 = vector.extract_strided_slice %5 {offsets = [14, 0], sizes = [2, 128], strides = [1, 1]} : vector<16x128xf32> to vector<2x128xf32>
    %cst_32 = arith.constant dense<0.000000e+00> : vector<2x128xf32>
    %193 = tpu.matmul %188, %6, %cst_32 {dimension_numbers = #tpu.dot_dimension_numbers<[1], [0], [0], [1], [0, 0, 1, 1], [], []>} : vector<2x32xf32>, vector<32x128xf32>, vector<2x128xf32> -> vector<2x128xf32>
    %194 = arith.addf %192, %193 : vector<2x128xf32>
    %195 = arith.negf %194 : vector<2x128xf32>
    %196 = math.exp %195 : vector<2x128xf32>
    %cst_33 = arith.constant 1.000000e+00 : f32
    %197 = vector.broadcast %cst_33 : f32 to vector<2x128xf32>
    %198 = arith.addf %197, %196 : vector<2x128xf32>
    %199 = arith.divf %197, %198 : vector<2x128xf32>
    %200 = math.tanh %194 : vector<2x128xf32>
    %201 = vector.extract_strided_slice %199 {offsets = [0, 0], sizes = [2, 32], strides = [1, 1]} : vector<2x128xf32> to vector<2x32xf32>
    %202 = vector.extract_strided_slice %199 {offsets = [0, 32], sizes = [2, 32], strides = [1, 1]} : vector<2x128xf32> to vector<2x32xf32>
    %203 = vector.extract_strided_slice %200 {offsets = [0, 64], sizes = [2, 32], strides = [1, 1]} : vector<2x128xf32> to vector<2x32xf32>
    %204 = vector.extract_strided_slice %199 {offsets = [0, 96], sizes = [2, 32], strides = [1, 1]} : vector<2x128xf32> to vector<2x32xf32>
    %205 = arith.mulf %202, %191 : vector<2x32xf32>
    %206 = arith.mulf %201, %203 : vector<2x32xf32>
    %207 = arith.addf %205, %206 : vector<2x32xf32>
    %208 = math.tanh %207 : vector<2x32xf32>
    %209 = arith.mulf %204, %208 : vector<2x32xf32>
    %cst_34 = arith.constant 7.000000e+00 : f32
    %210 = vector.broadcast %cst_34 : f32 to vector<2x1xf32>
    %211 = arith.cmpf olt, %210, %7 : vector<2x1xf32>
    %212 = vector.shape_cast %211 : vector<2x1xi1> to vector<2x1xi1>
    %213 = vector.broadcast %212 : vector<2x1xi1> to vector<2x32xi1>
    %214 = arith.select %213, %209, %188 : vector<2x32xi1>, vector<2x32xf32>
    %215 = vector.shape_cast %211 : vector<2x1xi1> to vector<2x1xi1>
    %216 = vector.broadcast %215 : vector<2x1xi1> to vector<2x32xi1>
    %217 = arith.select %216, %207, %191 : vector<2x32xi1>, vector<2x32xf32>
    %c0_35 = arith.constant 0 : index
    %c0_36 = arith.constant 0 : index
    %c0_37 = arith.constant 0 : index
    %218 = vector.load %arg5[%c0_35, %c0_36, %c0_37] : memref<2x8x32xf32, #tpu.memory_space<vmem>>, vector<2x8x32xf32>
    %219 = vector.shape_cast %218 : vector<2x8x32xf32> to vector<16x32xf32>
    %c0_38 = arith.constant 0 : index
    %c0_39 = arith.constant 0 : index
    %c0_40 = arith.constant 0 : index
    %220 = vector.load %arg6[%c0_38, %c0_39, %c0_40] : memref<2x8x32xf32, #tpu.memory_space<vmem>>, vector<2x8x32xf32>
    %221 = vector.shape_cast %220 : vector<2x8x32xf32> to vector<16x32xf32>
    %222 = arith.subf %219, %221 : vector<16x32xf32>
    %c0_41 = arith.constant 0 : index
    %c0_42 = arith.constant 0 : index
    %223 = vector.load %arg8[%c0_41, %c0_42] : memref<32x32xf32, #tpu.memory_space<vmem>>, vector<32x32xf32>
    %cst_43 = arith.constant dense<0.000000e+00> : vector<16x32xf32>
    %224 = tpu.matmul %222, %223, %cst_43 {dimension_numbers = #tpu.dot_dimension_numbers<[1], [0], [0], [1], [0, 0, 1, 1], [], []>} : vector<16x32xf32>, vector<32x32xf32>, vector<16x32xf32> -> vector<16x32xf32>
    %c0_44 = arith.constant 0 : index
    %c0_45 = arith.constant 0 : index
    %225 = vector.load %arg9[%c0_44, %c0_45] : memref<1x32xf32, #tpu.memory_space<vmem>>, vector<1x32xf32>
    %226 = vector.broadcast %225 : vector<1x32xf32> to vector<16x32xf32>
    %227 = arith.addf %224, %226 : vector<16x32xf32>
    %228 = math.tanh %227 : vector<16x32xf32>
    %229 = vector.shape_cast %228 : vector<16x32xf32> to vector<2x8x32xf32>
    %230 = tpu.concatenate %219, %228 in 1 : vector<16x32xf32>, vector<16x32xf32> -> vector<16x64xf32>
    %c0_46 = arith.constant 0 : index
    %c0_47 = arith.constant 0 : index
    %231 = vector.load %arg10[%c0_46, %c0_47] : memref<64x64xf32, #tpu.memory_space<vmem>>, vector<64x64xf32>
    %cst_48 = arith.constant dense<0.000000e+00> : vector<16x64xf32>
    %232 = tpu.matmul %230, %231, %cst_48 {dimension_numbers = #tpu.dot_dimension_numbers<[1], [0], [0], [1], [0, 0, 1, 1], [], []>} : vector<16x64xf32>, vector<64x64xf32>, vector<16x64xf32> -> vector<16x64xf32>
    %c0_49 = arith.constant 0 : index
    %c0_50 = arith.constant 0 : index
    %233 = vector.load %arg11[%c0_49, %c0_50] : memref<32x64xf32, #tpu.memory_space<vmem>>, vector<32x64xf32>
    %cst_51 = arith.constant dense<0.000000e+00> : vector<2x64xf32>
    %234 = tpu.matmul %214, %233, %cst_51 {dimension_numbers = #tpu.dot_dimension_numbers<[1], [0], [0], [1], [0, 0, 1, 1], [], []>} : vector<2x32xf32>, vector<32x64xf32>, vector<2x64xf32> -> vector<2x64xf32>
    %235 = vector.shape_cast %232 : vector<16x64xf32> to vector<2x8x64xf32>
    %236 = vector.shape_cast %234 : vector<2x64xf32> to vector<2x1x64xf32>
    %237 = vector.broadcast %236 : vector<2x1x64xf32> to vector<2x8x64xf32>
    %238 = arith.addf %235, %237 : vector<2x8x64xf32>
    %239 = math.tanh %238 : vector<2x8x64xf32>
    %c0_52 = arith.constant 0 : index
    %c0_53 = arith.constant 0 : index
    %240 = vector.load %arg12[%c0_52, %c0_53] : memref<1x64xf32, #tpu.memory_space<vmem>>, vector<1x64xf32>
    %241 = vector.shape_cast %240 : vector<1x64xf32> to vector<1x1x64xf32>
    %242 = vector.broadcast %241 : vector<1x1x64xf32> to vector<2x8x64xf32>
    %243 = arith.mulf %239, %242 : vector<2x8x64xf32>
    %244 = vector.extract_strided_slice %243 {offsets = [0, 0, 0], sizes = [2, 8, 32], strides = [1, 1, 1]} : vector<2x8x64xf32> to vector<2x8x32xf32>
    %cst_54 = arith.constant dense<0.000000e+00> : vector<2x8xf32>
    %245 = vector.multi_reduction <add>, %244, %cst_54 [2] : vector<2x8x32xf32> to vector<2x8xf32>
    %246 = vector.extract_strided_slice %243 {offsets = [0, 0, 32], sizes = [2, 8, 32], strides = [1, 1, 1]} : vector<2x8x64xf32> to vector<2x8x32xf32>
    %cst_55 = arith.constant dense<0.000000e+00> : vector<2x8xf32>
    %247 = vector.multi_reduction <add>, %246, %cst_55 [2] : vector<2x8x32xf32> to vector<2x8xf32>
    %cst_56 = arith.constant dense<0xFF800000> : vector<2xf32>
    %248 = vector.multi_reduction <maximumf>, %245, %cst_56 [1] : vector<2x8xf32> to vector<2xf32>
    %249 = vector.shape_cast %248 : vector<2xf32> to vector<2x1xf32>
    %250 = vector.broadcast %249 : vector<2x1xf32> to vector<2x8xf32>
    %251 = arith.subf %245, %250 : vector<2x8xf32>
    %252 = math.exp %251 : vector<2x8xf32>
    %cst_57 = arith.constant dense<0.000000e+00> : vector<2xf32>
    %253 = vector.multi_reduction <add>, %252, %cst_57 [1] : vector<2x8xf32> to vector<2xf32>
    %254 = vector.shape_cast %253 : vector<2xf32> to vector<2x1xf32>
    %255 = tpu.reciprocal %254 {approx = true} : vector<2x1xf32> -> vector<2x1xf32>
    %256 = vector.broadcast %255 : vector<2x1xf32> to vector<2x8xf32>
    %257 = arith.mulf %252, %256 : vector<2x8xf32>
    %cst_58 = arith.constant dense<0xFF800000> : vector<2xf32>
    %258 = vector.multi_reduction <maximumf>, %247, %cst_58 [1] : vector<2x8xf32> to vector<2xf32>
    %259 = vector.shape_cast %258 : vector<2xf32> to vector<2x1xf32>
    %260 = vector.broadcast %259 : vector<2x1xf32> to vector<2x8xf32>
    %261 = arith.subf %247, %260 : vector<2x8xf32>
    %262 = math.exp %261 : vector<2x8xf32>
    %cst_59 = arith.constant dense<0.000000e+00> : vector<2xf32>
    %263 = vector.multi_reduction <add>, %262, %cst_59 [1] : vector<2x8xf32> to vector<2xf32>
    %264 = vector.shape_cast %263 : vector<2xf32> to vector<2x1xf32>
    %265 = tpu.reciprocal %264 {approx = true} : vector<2x1xf32> -> vector<2x1xf32>
    %266 = vector.broadcast %265 : vector<2x1xf32> to vector<2x8xf32>
    %267 = arith.mulf %262, %266 : vector<2x8xf32>
    %268 = vector.shape_cast %257 : vector<2x8xf32> to vector<2x8x1xf32>
    %269 = vector.broadcast %268 : vector<2x8x1xf32> to vector<2x8x32xf32>
    %270 = arith.mulf %269, %218 : vector<2x8x32xf32>
    %cst_60 = arith.constant dense<0.000000e+00> : vector<2x32xf32>
    %271 = vector.multi_reduction <add>, %270, %cst_60 [1] : vector<2x8x32xf32> to vector<2x32xf32>
    %272 = vector.shape_cast %267 : vector<2x8xf32> to vector<2x8x1xf32>
    %273 = vector.broadcast %272 : vector<2x8x1xf32> to vector<2x8x32xf32>
    %274 = arith.mulf %273, %229 : vector<2x8x32xf32>
    %cst_61 = arith.constant dense<0.000000e+00> : vector<2x32xf32>
    %275 = vector.multi_reduction <add>, %274, %cst_61 [1] : vector<2x8x32xf32> to vector<2x32xf32>
    %c0_62 = arith.constant 0 : index
    %c0_63 = arith.constant 0 : index
    %c0_64 = arith.constant 0 : index
    %276 = vector.load %arg7[%c0_62, %c0_63, %c0_64] : memref<2x8x32xf32, #tpu.memory_space<vmem>>, vector<2x8x32xf32>
    %c0_65 = arith.constant 0 : index
    %c0_66 = arith.constant 0 : index
    %277 = vector.load %arg13[%c0_65, %c0_66] : memref<1x32xf32, #tpu.memory_space<vmem>>, vector<1x32xf32>
    %278 = vector.shape_cast %277 : vector<1x32xf32> to vector<1x1x32xf32>
    %279 = vector.broadcast %278 : vector<1x1x32xf32> to vector<2x8x32xf32>
    %280 = arith.mulf %276, %279 : vector<2x8x32xf32>
    %cst_67 = arith.constant dense<0.000000e+00> : vector<2x8xf32>
    %281 = vector.multi_reduction <add>, %280, %cst_67 [2] : vector<2x8x32xf32> to vector<2x8xf32>
    %cst_68 = arith.constant dense<0xFF800000> : vector<2xf32>
    %282 = vector.multi_reduction <maximumf>, %281, %cst_68 [1] : vector<2x8xf32> to vector<2xf32>
    %283 = vector.shape_cast %282 : vector<2xf32> to vector<2x1xf32>
    %284 = vector.broadcast %283 : vector<2x1xf32> to vector<2x8xf32>
    %285 = arith.subf %281, %284 : vector<2x8xf32>
    %286 = math.exp %285 : vector<2x8xf32>
    %cst_69 = arith.constant dense<0.000000e+00> : vector<2xf32>
    %287 = vector.multi_reduction <add>, %286, %cst_69 [1] : vector<2x8xf32> to vector<2xf32>
    %288 = vector.shape_cast %287 : vector<2xf32> to vector<2x1xf32>
    %289 = tpu.reciprocal %288 {approx = true} : vector<2x1xf32> -> vector<2x1xf32>
    %290 = vector.broadcast %289 : vector<2x1xf32> to vector<2x8xf32>
    %291 = arith.mulf %286, %290 : vector<2x8xf32>
    %292 = vector.shape_cast %291 : vector<2x8xf32> to vector<2x8x1xf32>
    %293 = vector.broadcast %292 : vector<2x8x1xf32> to vector<2x8x32xf32>
    %294 = arith.mulf %293, %276 : vector<2x8x32xf32>
    %cst_70 = arith.constant dense<0.000000e+00> : vector<2x32xf32>
    %295 = vector.multi_reduction <add>, %294, %cst_70 [1] : vector<2x8x32xf32> to vector<2x32xf32>
    %c0_71 = arith.constant 0 : index
    %c0_72 = arith.constant 0 : index
    %296 = vector.load %arg14[%c0_71, %c0_72] : memref<32x32xf32, #tpu.memory_space<vmem>>, vector<32x32xf32>
    %cst_73 = arith.constant dense<0.000000e+00> : vector<2x32xf32>
    %297 = tpu.matmul %271, %296, %cst_73 {dimension_numbers = #tpu.dot_dimension_numbers<[1], [0], [0], [1], [0, 0, 1, 1], [], []>} : vector<2x32xf32>, vector<32x32xf32>, vector<2x32xf32> -> vector<2x32xf32>
    %c0_74 = arith.constant 0 : index
    %c0_75 = arith.constant 0 : index
    %298 = vector.load %arg15[%c0_74, %c0_75] : memref<32x32xf32, #tpu.memory_space<vmem>>, vector<32x32xf32>
    %cst_76 = arith.constant dense<0.000000e+00> : vector<2x32xf32>
    %299 = tpu.matmul %275, %298, %cst_76 {dimension_numbers = #tpu.dot_dimension_numbers<[1], [0], [0], [1], [0, 0, 1, 1], [], []>} : vector<2x32xf32>, vector<32x32xf32>, vector<2x32xf32> -> vector<2x32xf32>
    %300 = arith.addf %297, %299 : vector<2x32xf32>
    %c0_77 = arith.constant 0 : index
    %c0_78 = arith.constant 0 : index
    %301 = vector.load %arg16[%c0_77, %c0_78] : memref<32x32xf32, #tpu.memory_space<vmem>>, vector<32x32xf32>
    %cst_79 = arith.constant dense<0.000000e+00> : vector<2x32xf32>
    %302 = tpu.matmul %295, %301, %cst_79 {dimension_numbers = #tpu.dot_dimension_numbers<[1], [0], [0], [1], [0, 0, 1, 1], [], []>} : vector<2x32xf32>, vector<32x32xf32>, vector<2x32xf32> -> vector<2x32xf32>
    %303 = arith.addf %300, %302 : vector<2x32xf32>
    %c0_80 = arith.constant 0 : index
    %c0_81 = arith.constant 0 : index
    %304 = vector.load %arg17[%c0_80, %c0_81] : memref<32x32xf32, #tpu.memory_space<vmem>>, vector<32x32xf32>
    %cst_82 = arith.constant dense<0.000000e+00> : vector<2x32xf32>
    %305 = tpu.matmul %217, %304, %cst_82 {dimension_numbers = #tpu.dot_dimension_numbers<[1], [0], [0], [1], [0, 0, 1, 1], [], []>} : vector<2x32xf32>, vector<32x32xf32>, vector<2x32xf32> -> vector<2x32xf32>
    %306 = arith.addf %303, %305 : vector<2x32xf32>
    %c0_83 = arith.constant 0 : index
    %c0_84 = arith.constant 0 : index
    %307 = vector.load %arg18[%c0_83, %c0_84] : memref<1x32xf32, #tpu.memory_space<vmem>>, vector<1x32xf32>
    %308 = vector.broadcast %307 : vector<1x32xf32> to vector<2x32xf32>
    %309 = arith.addf %306, %308 : vector<2x32xf32>
    %310 = math.tanh %309 : vector<2x32xf32>
    %c0_85 = arith.constant 0 : index
    %c0_86 = arith.constant 0 : index
    %311 = vector.load %arg19[%c0_85, %c0_86] : memref<32x8xf32, #tpu.memory_space<vmem>>, vector<32x8xf32>
    %cst_87 = arith.constant dense<0.000000e+00> : vector<2x8xf32>
    %312 = tpu.matmul %310, %311, %cst_87 {dimension_numbers = #tpu.dot_dimension_numbers<[1], [0], [0], [1], [0, 0, 1, 1], [], []>} : vector<2x32xf32>, vector<32x8xf32>, vector<2x8xf32> -> vector<2x8xf32>
    %c0_88 = arith.constant 0 : index
    %c0_89 = arith.constant 0 : index
    %313 = vector.load %arg20[%c0_88, %c0_89] : memref<1x8xf32, #tpu.memory_space<vmem>>, vector<1x8xf32>
    %314 = vector.broadcast %313 : vector<1x8xf32> to vector<2x8xf32>
    %315 = arith.addf %312, %314 : vector<2x8xf32>
    %c0_90 = arith.constant 0 : index
    %c0_91 = arith.constant 0 : index
    %316 = vector.load %arg21[%c0_90, %c0_91] : memref<2x8xf32, #tpu.memory_space<vmem>>, vector<2x8xf32>
    tpu.vector_store %arg21[%c0_90, %c0_91], %315 {strides = array<i32>} : memref<2x8xf32, #tpu.memory_space<vmem>>, vector<2x8xf32>,
    return
  }
}

</mosaic_0001>

<bundles_post_ra>
// kernel: vqac_forward.1
= control target key start
LH: loop header
LB: loop body
LE: loop exit
PB: predicated region body
PF: predicated region fallthrough
CT: control target
= control target key end

     0   :  { %s3730_s0 = inlined_call_operand.vmem [shape: f32[16,32], index: 0, kind: input, shape index: {}]   ;;  %s3731_s1 = inlined_call_operand.vmem [shape: f32[2,1], index: 1, kind: input, shape index: {}]   ;;  %s3732_s2 = inlined_call_operand.vmem [shape: f32[32,128], index: 2, kind: input, shape index: {}]   ;;  %s3733_s3 = inlined_call_operand.vmem [shape: f32[32,128], index: 3, kind: input, shape index: {}]   ;;  %s3734_s4 = inlined_call_operand.vmem [shape: f32[1,128], index: 4, kind: input, shape index: {}]   ;;  %s3735_s5 = inlined_call_operand.hbm [shape: f32[2,8,32], index: 5, kind: input, shape index: {}]   ;;  %s3736_s6 = inlined_call_operand.hbm [shape: f32[2,8,32], index: 6, kind: input, shape index: {}]   ;;  %s3737_s7 = inlined_call_operand.hbm [shape: f32[2,8,32], index: 7, kind: input, shape index: {}]   ;;  %s3738_s8 = inlined_call_operand.vmem [shape: f32[32,32], index: 8, kind: input, shape index: {}]   ;;  %s3739_s9 = inlined_call_operand.vmem [shape: f32[1,32], index: 9, kind: input, shape index: {}, may-alias: {9,18}]   ;;  %s3740_s10 = inlined_call_operand.vmem [shape: f32[64,64], index: 10, kind: input, shape index: {}]   ;;  %s3741_s11 = inlined_call_operand.vmem [shape: f32[32,64], index: 11, kind: input, shape index: {}]   ;;  %s3742_s12 = inlined_call_operand.vmem [shape: f32[1,64], index: 12, kind: input, shape index: {}]   ;;  %s3743_s13 = inlined_call_operand.hbm [shape: f32[1,32], index: 13, kind: input, shape index: {}]   ;;  %s3744_s14 = inlined_call_operand.vmem [shape: f32[32,32], index: 14, kind: input, shape index: {}]   ;;  %s3745_s15 = inlined_call_operand.hbm [shape: f32[32,32], index: 15, kind: input, shape index: {}]   ;;  %s3746_s16 = inlined_call_operand.hbm [shape: f32[32,32], index: 16, kind: input, shape index: {}]   ;;  %s3747_s17 = inlined_call_operand.hbm [shape: f32[32,32], index: 17, kind: input, shape index: {}]   ;;  %s3748_s18 = inlined_call_operand.vmem [shape: f32[1,32], index: 18, kind: input, shape index: {}, may-alias: {9,18}]   ;;  %s3749_s19 = inlined_call_operand.hbm [shape: f32[32,8], index: 19, kind: input, shape index: {}]   ;;  %s3750_s20 = inlined_call_operand.vmem [shape: f32[1,8], index: 20, kind: input, shape index: {}]   ;;  %s3751_s21 = inlined_call_operand.vmem [shape: f32[2,8], index: 21, kind: output, shape index: {}]  }
   0x1   :  { %3756 = sst [smem:[#allocation20_spill]] %s3730_s0 }
   0x2   :  { %3757 = sst [smem:[#allocation21_spill]] %s3731_s1 }
   0x3   :  { %3758 = sst [smem:[#allocation22_spill]] %s3732_s2 }
   0x4   :  { %3759 = sst [smem:[#allocation23_spill]] %s3733_s3 }
   0x5   :  { %3760 = sst [smem:[#allocation24_spill]] %s3734_s4 }
   0x6   :  { %3761 = sst [smem:[#allocation25_spill]] %s3735_s5 }
   0x7   :  { %26 = vsyncpa [#allocation3], 0 }
   0x8   :  { %27 = vsyncpa [#allocation5], 0 }
   0x9   :  { %28 = vsyncpa [#allocation8], 0 }
   0xa   :  { %29 = vsyncpa [#allocation11], 0 }
   0xb   :  { %30 = vsyncpa [#allocation14], 0  ;;  %s3050_s2 = smov [#allocation4]   ;;  %s3051_s26 = smov [#allocation7]  }
   0xc   :  { %s58_s25 = sshll.u32 %s3050_s2, 4  ;;  %s93_s27 = sshll.u32 %s3051_s26, 4  ;;  %s59_s25 = int_to_ptr.vmem [resolvable:$true] %s58_s25  ;;  %s3178_s27 = int_to_ptr.vmem [resolvable:$true] %s93_s27 }
   0xd   :  { %s2864_s29 = scalar_lea.hbm %s3736_s6, 256 }
   0xe   :  { %p2865_p0 = scmp.ne.s32.totalorder %s3736_s6, %s2864_s29  ;;  %p2868_p1 = scmp.lt.u32.totalorder %s2864_s29, %s3736_s6 }
  0x10   :  { %p2870_p2 = pnand %p2868_p1, %p2865_p0 }
  0x12   :  { %2873 = shalt.err (!%p2870_p2)
}
  0x13   :  { %s2874_s22 = scalar_lea.vmem %s59_s25, 256  ;;  %p2879_p4 = scmp.lt.s32.totalorder %s59_s25, %s59_s25 }
  0x14   :  { %p2875_p3 = scmp.ne.s32.totalorder %s59_s25, %s2874_s22  ;;  %p2880_p5 = scmp.lt.s32.totalorder %s2874_s22, %s2874_s22 }
  0x16   :  { %p2881_p6 = por %p2880_p5, %p2879_p4 }
  0x18   :  { %p2882_p7 = pnand %p2881_p6, %p2875_p3 }
  0x1a   :  { %2885 = shalt.err (!%p2882_p7)
}
  0x1b   :  { %s3052_s23 = smov 128   ;;  %s3053_s1 = smov 8  }
  0x1c   :  { %64 = dma.hbm_to_vmem [thread:$0]  %s3736_s6, 256, %s59_s25, [#allocation5], %s3052_s23, %s3052_s23, %s3053_s1  }
  0x1d   :  { %s2886_s28 = scalar_lea.hbm %s3743_s13, 16 }
  0x1e   :  { %p2887_p8 = scmp.ne.s32.totalorder %s3743_s13, %s2886_s28  ;;  %p2890_p9 = scmp.lt.u32.totalorder %s2886_s28, %s3743_s13 }
  0x20   :  { %p2892_p10 = pnand %p2890_p9, %p2887_p8 }
  0x22   :  { %2895 = shalt.err (!%p2892_p10)
}
  0x23   :  { %s2896_s5 = scalar_lea.vmem %s3178_s27, 16  ;;  %s2900_s6 = scalar_lea.vmem %s3178_s27, 32 }
  0x24   :  { %p2897_p11 = scmp.ne.s32.totalorder %s3178_s27, %s2896_s5  ;;  %p2901_p12 = scmp.lt.s32.totalorder %s3178_s27, %s3178_s27 }
  0x25   :  { %p2902_p13 = scmp.lt.s32.totalorder %s2900_s6, %s2896_s5 }
  0x27   :  { %p2903_p0 = por %p2902_p13, %p2901_p12 }
  0x29   :  { %p2904_p1 = pnand %p2903_p0, %p2897_p11 }
  0x2b   :  { %2907 = shalt.err (!%p2904_p1)
}
  0x2c   :  { %96 = dma.hbm_to_vmem [thread:$0]  %s3743_s13, 16, %s3178_s27, [#allocation8]  }
  0x2d   :  { %s3054_s24 = smov [#allocation10]   ;;  %s3055_s26 = smov [#allocation2]  }
  0x2e   :  { %s116_s2 = sshll.u32 %s3054_s24, 4  ;;  %s46_s3 = sshll.u32 %s3055_s26, 4  ;;  %s117_s2 = int_to_ptr.vmem [resolvable:$true] %s116_s2  ;;  %s3213_s3 = int_to_ptr.vmem [resolvable:$true] %s46_s3 }
  0x2f   :  { %s2908_s0 = scalar_lea.hbm %s3746_s16, 512 }
  0x30   :  { %p2909_p2 = scmp.ne.s32.totalorder %s3746_s16, %s2908_s0  ;;  %p2912_p3 = scmp.lt.u32.totalorder %s2908_s0, %s3746_s16 }
  0x32   :  { %p2914_p4 = pnand %p2912_p3, %p2909_p2 }
  0x34   :  { %2917 = shalt.err (!%p2914_p4)
}
  0x35   :  { %s2918_s13 = scalar_lea.vmem %s117_s2, 512  ;;  %p2923_p6 = scmp.lt.s32.totalorder %s117_s2, %s117_s2 }
  0x36   :  { %p2919_p5 = scmp.ne.s32.totalorder %s117_s2, %s2918_s13  ;;  %p2924_p7 = scmp.lt.s32.totalorder %s2918_s13, %s2918_s13 }
  0x38   :  { %p2925_p8 = por %p2924_p7, %p2923_p6 }
  0x3a   :  { %p2926_p9 = pnand %p2925_p8, %p2919_p5 }
  0x3c   :  { %2929 = shalt.err (!%p2926_p9)
}
  0x3d   :  { %122 = dma.hbm_to_vmem [thread:$0]  %s3746_s16, 512, %s117_s2, [#allocation11], %s3052_s23, %s3052_s23, %s3053_s1  }
  0x3e   :  { %s3762_s26 = sld [smem:[#allocation25_spill]] }
  0x44   :  { %s2930_s28 = scalar_lea.hbm %s3762_s26, 256 }
  0x45   :  { %p2931_p10 = scmp.ne.s32.totalorder %s3762_s26, %s2930_s28  ;;  %p2934_p11 = scmp.lt.u32.totalorder %s2930_s28, %s3762_s26 }
  0x47   :  { %p2936_p12 = pnand %p2934_p11, %p2931_p10 }
  0x49   :  { %2939 = shalt.err (!%p2936_p12)
}
  0x4a   :  { %s2940_s5 = scalar_lea.vmem %s3213_s3, 256  ;;  %p2945_p0 = scmp.lt.s32.totalorder %s3213_s3, %s3213_s3 }
  0x4b   :  { %p2941_p13 = scmp.ne.s32.totalorder %s3213_s3, %s2940_s5  ;;  %p2946_p1 = scmp.lt.s32.totalorder %s2940_s5, %s2940_s5 }
  0x4d   :  { %p2947_p2 = por %p2946_p1, %p2945_p0 }
  0x4f   :  { %p2948_p3 = pnand %p2947_p2, %p2941_p13 }
  0x51   :  { %2951 = shalt.err (!%p2948_p3)
}
  0x52   :  { %52 = dma.hbm_to_vmem [thread:$0]  %s3762_s26, 256, %s3213_s3, [#allocation3], %s3052_s23, %s3052_s23, %s3053_s1  }
  0x53   :  { %s3056_s6 = smov [#allocation6]   ;;  %s3057_s27 = smov [#allocation9]  }
  0x54   :  { %s70_s13 = sshll.u32 %s3056_s6, 4  ;;  %s104_s25 = sshll.u32 %s3057_s27, 4  ;;  %s71_s13 = int_to_ptr.vmem [resolvable:$true] %s70_s13  ;;  %s3250_s25 = int_to_ptr.vmem [resolvable:$true] %s104_s25 }
  0x55   :  { %s2952_s28 = scalar_lea.hbm %s3737_s7, 256 }
  0x56   :  { %p2953_p4 = scmp.ne.s32.totalorder %s3737_s7, %s2952_s28  ;;  %p2956_p5 = scmp.lt.u32.totalorder %s2952_s28, %s3737_s7 }
  0x58   :  { %p2958_p6 = pnand %p2956_p5, %p2953_p4 }
  0x5a   :  { %2961 = shalt.err (!%p2958_p6)
}
  0x5b   :  { %s2962_s3 = scalar_lea.vmem %s71_s13, 256  ;;  %p2967_p8 = scmp.lt.s32.totalorder %s71_s13, %s71_s13 }
  0x5c   :  { %p2963_p7 = scmp.ne.s32.totalorder %s71_s13, %s2962_s3  ;;  %p2968_p9 = scmp.lt.s32.totalorder %s2962_s3, %s2962_s3 }
  0x5e   :  { %p2969_p10 = por %p2968_p9, %p2967_p8 }
  0x60   :  { %p2970_p11 = pnand %p2969_p10, %p2963_p7 }
  0x62   :  { %2973 = shalt.err (!%p2970_p11)
}
  0x63   :  { %76 = dma.hbm_to_vmem [thread:$0]  %s3737_s7, 256, %s71_s13, [#allocation5], %s3052_s23, %s3052_s23, %s3053_s1  }
  0x64   :  { %s2974_s6 = scalar_lea.hbm %s3745_s15, 512 }
  0x65   :  { %p2975_p12 = scmp.ne.s32.totalorder %s3745_s15, %s2974_s6  ;;  %p2978_p13 = scmp.lt.u32.totalorder %s2974_s6, %s3745_s15 }
  0x67   :  { %p2980_p0 = pnand %p2978_p13, %p2975_p12 }
  0x69   :  { %2983 = shalt.err (!%p2980_p0)
}
  0x6a   :  { %s2984_s29 = scalar_lea.vmem %s3250_s25, 512  ;;  %p2989_p2 = scmp.lt.s32.totalorder %s3250_s25, %s3250_s25 }
  0x6b   :  { %p2985_p1 = scmp.ne.s32.totalorder %s3250_s25, %s2984_s29  ;;  %p2990_p3 = scmp.lt.s32.totalorder %s2984_s29, %s2984_s29 }
  0x6d   :  { %p2991_p4 = por %p2990_p3, %p2989_p2 }
  0x6f   :  { %p2992_p5 = pnand %p2991_p4, %p2985_p1 }
  0x71   :  { %2995 = shalt.err (!%p2992_p5)
}
  0x72   :  { %110 = dma.hbm_to_vmem [thread:$0]  %s3745_s15, 512, %s3250_s25, [#allocation8], %s3052_s23, %s3052_s23, %s3053_s1  }
  0x73   :  { %s3058_s0 = smov [#allocation12]   ;;  %s3059_s30 = smov [#allocation13]  }
  0x74   :  { %s128_s4 = sshll.u32 %s3058_s0, 4  ;;  %s142_s3 = sshll.u32 %s3059_s30, 4  ;;  %s129_s4 = int_to_ptr.vmem [resolvable:$true] %s128_s4  ;;  %s3287_s3 = int_to_ptr.vmem [resolvable:$true] %s142_s3 }
  0x75   :  { %s2996_s16 = scalar_lea.hbm %s3747_s17, 512 }
  0x76   :  { %p2997_p6 = scmp.ne.s32.totalorder %s3747_s17, %s2996_s16  ;;  %p3000_p7 = scmp.lt.u32.totalorder %s2996_s16, %s3747_s17 }
  0x78   :  { %p3002_p8 = pnand %p3000_p7, %p2997_p6 }
  0x7a   :  { %3005 = shalt.err (!%p3002_p8)
}
  0x7b   :  { %s3006_s15 = scalar_lea.vmem %s129_s4, 512  ;;  %p3011_p10 = scmp.lt.s32.totalorder %s129_s4, %s129_s4 }
  0x7c   :  { %p3007_p9 = scmp.ne.s32.totalorder %s129_s4, %s3006_s15  ;;  %p3012_p11 = scmp.lt.s32.totalorder %s3006_s15, %s3006_s15 }
  0x7e   :  { %p3013_p12 = por %p3012_p11, %p3011_p10 }
  0x80   :  { %p3014_p13 = pnand %p3013_p12, %p3007_p9 }
  0x82   :  { %3017 = shalt.err (!%p3014_p13)
}
  0x83   :  { %134 = dma.hbm_to_vmem [thread:$0]  %s3747_s17, 512, %s129_s4, [#allocation11], %s3052_s23, %s3052_s23, %s3053_s1  }
  0x84   :  { %s3018_s7 = scalar_lea.hbm %s3749_s19, 512 }
  0x85   :  { %p3019_p0 = scmp.ne.s32.totalorder %s3749_s19, %s3018_s7  ;;  %p3022_p1 = scmp.lt.u32.totalorder %s3018_s7, %s3749_s19 }
  0x87   :  { %p3024_p2 = pnand %p3022_p1, %p3019_p0 }
  0x89   :  { %3027 = shalt.err (!%p3024_p2)
}
  0x8a   :  { %s3028_s5 = scalar_lea.vmem %s3287_s3, 512  ;;  %p3033_p4 = scmp.lt.s32.totalorder %s3287_s3, %s3287_s3 }
  0x8b   :  { %p3029_p3 = scmp.ne.s32.totalorder %s3287_s3, %s3028_s5  ;;  %p3034_p5 = scmp.lt.s32.totalorder %s3028_s5, %s3028_s5 }
  0x8d   :  { %p3035_p6 = por %p3034_p5, %p3033_p4 }
  0x8f   :  { %p3036_p7 = pnand %p3035_p6, %p3029_p3 }
  0x91   :  { %3039 = shalt.err (!%p3036_p7)
}
  0x92   :  { %148 = dma.hbm_to_vmem [thread:$0]  %s3749_s19, 512, %s3287_s3, [#allocation14], %s3052_s23, %s3052_s23, %s3053_s1  }
  0x93   :  { %3040 = dma.done.wait [#allocation3], 256  }
  0x94   :  { %3041 = vsyncadd [#allocation3], 4294967040 }
  0x95   :  { %3042 = dma.done.wait [#allocation5], 512  }
  0x96   :  { %3043 = vsyncadd [#allocation5], 4294966784 }
  0x97   :  { %3044 = dma.done.wait [#allocation8], 528  }
  0x98   :  { %3045 = vsyncadd [#allocation8], 4294966768 }
  0x99   :  { %3046 = dma.done.wait [#allocation11], 1024  }
  0x9a   :  { %3047 = vsyncadd [#allocation11], 4294966272 }
  0x9b   :  { %3048 = dma.done.wait [#allocation14], 512  }
  0x9c   :  { %3049 = vsyncadd [#allocation14], 4294966784  ;;  %v3060_v0 = vmov 0.0|0.0   ;;  %vm3061_vm0 = vmmov 0   ;;  %v3062_v1 = vmov 0.0   ;;  %s3763_s23 = sld [smem:[#allocation22_spill]] }
  0x9d   :  { %2644 = vmatprep.subr.bf16.mxu1 %v3060_v0  ;;  %2460 = vmatprep.mubr.msk.f32.mxu1 %vm3061_vm0, %v3062_v1  ;;  %s3764_s27 = sld [smem:[#allocation23_spill]]  ;;  %vm188_vm1 = vcmask 261120   ;;  %s3765_s0 = sld [smem:[#allocation20_spill]]  ;;  %v3063_v17 = vmov 0  }
  0x9e   :  { %s3766_s1 = sld [smem:[#allocation21_spill]]  ;;  %2770 = vset.pattern.permute.xlu1 %v3063_v17  ;;  %2771 = vset.pattern.permute.xlu0 %v3063_v17  ;;  %s3767_s6 = sld [smem:[#allocation24_spill]] }
  0x9f   :  { %s3065_s22 = smov 32   ;;  %s3066_s15 = smov 96  }
  0xa2   :  { %v177_v2 = vld [vmem:[%s3763_s23] sm:$0xff]  ;;  %v178_v3 = vld [vmem:[%s3763_s23 + $0x8] sm:$0xff]  ;;  %v179_v7 = vld [vmem:[%s3763_s23 + $0x10] sm:$0xff] }
  0xa3   :  { %v270_v4 = vld [vmem:[%s3764_s27] sm:$0xff]  ;;  %v2636_v5 = vpack.c.bf16 %v178_v3, %v177_v2  ;;  %v271_v6 = vld [vmem:[%s3764_s27 + $0x8] sm:$0xff]  ;;  %v180_v8 = vld [vmem:[%s3763_s23 + $0x18] sm:$0xff] }
  0xa4   :  { %v3345_v9 = vpack.c.bf16 %v271_v6, %v270_v4  ;;  %v2640_v10 = vpack.c.bf16 %v180_v8, %v179_v7  ;;  %v175_v11 = vld [vmem:[%s3765_s0] sm:$0xff]  ;;  %v272_v12 = vld [vmem:[%s3764_s27 + $0x10] sm:$0xff]  ;;  %v273_v13 = vld [vmem:[%s3764_s27 + $0x18] sm:$0xff]  ;;  %s3064_s27 = smov 64  }
  0xa5   :  { %2637 = vmatprep.subr.bf16.mxu0 %v2636_v5  ;;  %2449 = vmatprep.mubr.msk.f32.mxu0 %vm188_vm1, %v175_v11  ;;  %v3358_v14 = vpack.c.bf16 %v273_v13, %v272_v12  ;;  %v176_v15 = vld [vmem:[%s3765_s0 + $0x8] sm:$0xff]  ;;  %v3384_v16 = vld [vmem:[%s3766_s1] sm:$0x3] }
  0xa6   :  { %2639 = vmatpush3.bf16.msra.mxu0 %v2636_v5  ;;  %2646 = vmatpush3.bf16.msra.mxu1 %v3345_v9  ;;  %vm2312_vm2 = vcmp.gt.f32.partialorder %v3384_v16, 0.0  ;;  %v2308_v19 = vld [vmem:[%s3767_s6] ss:$0 sm:$0xff]  ;;  %vm2315_vm4 = vcmp.gt.f32.partialorder %v3384_v16, 1.0  ;;  %vm2318_vm6 = vcmp.gt.f32.partialorder %v3384_v16, 2.0  ;;  %vm2321_vm8 = vcmp.gt.f32.partialorder %v3384_v16, 3.0 }
  0xa7   :  { %2641 = vmatprep.subr.bf16.mxu0 %v2640_v10  ;;  %2647 = vmatprep.subr.bf16.mxu1 %v3060_v0  ;;  %v374_v18 = vsel %vm2312_vm2, 1, %v3063_v17  ;;  %v488_v54 = vsel %vm2315_vm4, 1, %v3063_v17  ;;  %vm2324_vm10 = vcmp.gt.f32.partialorder %v3384_v16, 4.0  ;;  %vm2327_vm12 = vcmp.gt.f32.partialorder %v3384_v16, 5.0 }
  0xa8   :  { %376 = vperm.xlu1 %2770, %v374_v18   ;;  %vm2330_vm14 = vcmp.gt.f32.partialorder %v3384_v16, 6.0  ;;  %vm2333_vm2 = vcmp.gt.f32.partialorder %v3384_v16, 7.0 }
  0xaa   :  { %2643 = vmatpush3.bf16.msra.mxu0 %v2640_v10  ;;  %2649 = vmatpush3.bf16.msra.mxu1 %v3358_v14 }
  0xab   :  { %2650 = vmatprep.subr.bf16.mxu0 %v3060_v0  ;;  %2656 = vmatprep.subr.bf16.mxu1 %v3060_v0 }
  0xad   :  { %2450 = vmatmul.mubr.msk.f32.vlgmr.msra.gmra.mrb[0].mxu0 %vm188_vm1, %v176_v15  ;;  %2461 = vmatmul.mubr.f32.vlgmr.msra.gmra.mrb[0].mxu1 %v3062_v1 }
  0xae   :  { %2652 = vmatpush3.bf16.msra.mxu0 %v3345_v9  ;;  %2471 = vmatprep.mubr.msk.f32.mxu0 %vm3061_vm0, %v3062_v1 }
  0xaf   :  { %2653 = vmatprep.subr.bf16.mxu0 %v3060_v0  ;;  %2658 = vmatpush3.bf16.msra.mxu1 %v3345_v9 }
  0xb0   :  { %2659 = vmatprep.subr.bf16.mxu1 %v3060_v0  ;;  %2482 = vmatprep.mubr.msk.f32.mxu1 %vm3061_vm0, %v3062_v1 }
  0xb2   :  { %2655 = vmatpush3.bf16.msra.mxu0 %v3358_v14 }
  0xb3   :  { %2661 = vmatpush3.bf16.msra.mxu1 %v3358_v14  ;;  %2662 = vmatprep.subr.bf16.mxu0 %v3060_v0 }
  0xb4   :  { %2668 = vmatprep.subr.bf16.mxu1 %v3060_v0 }
 0x127   :  { %v377_v38 = vpop.permute.xlu1 %376 }
 0x128   :  { %vm378_vm3 = vcmp.eq.s32.totalorder %v377_v38, 1 }
 0x180   :  { %v2451_v20 = vpop.f32.mrb[0].mxu0  ;;  %v344_v21 = vpop.f32.mrb[0].mxu1 }
 0x181   :  { %v3393_v22 = vadd.f32 %v2451_v20, %v2308_v19  ;;  %v261_v23 = vpop.f32.mrb[1].mxu0  ;;  %v2462_v24 = vpop.f32.mrb[1].mxu1 }
 0x182   :  { %v3395_v25 = vadd.f32 %v2308_v19, %v261_v23 }
 0x184   :  { %v348_v26 = vadd.f32 %v344_v21, %v3395_v25 }
 0x186   :  { %2772 = vtanh.f32 %v348_v26  ;;  %v2311_v28 = vmul.f32 -1.442695, %v348_v26 }
 0x188   :  { %2774 = vpow2.f32 %v2311_v28 }
 0x190   :  { %v2773_v27 = vpop.eup %2772 }
 0x191   :  { %358 = vrot.lane.b32.xlu0 %v2773_v27, %s3064_s27  ;;  %v616_v27 = vsel %vm2318_vm6, 1, %v3063_v17  ;;  %vm1604_vm6 = vcmask 58368  }
 0x192   :  { %v2775_v29 = vpop.eup %2774 }
 0x193   :  { %v352_v30 = vadd.f32 1.0, %v2775_v29 }
 0x195   :  { %2776 = vrcp.f32 %v352_v30 }
 0x19f   :  { %v2777_v31 = vpop.eup %2776 }
 0x1a0   :  { %v356_v34 = vmul.f32 0.0, %v2777_v31 }
 0x203   :  { %v359_v32 = vpop.permute.xlu0 %358 }
 0x204   :  { %v361_v33 = vmul.f32 %v2777_v31, %v359_v32 }
 0x206   :  { %363 = vrot.lane.b32.xlu0 %v361_v33, %s3065_s22 }
 0x278   :  { %v364_v35 = vpop.permute.xlu0 %363 }
 0x279   :  { %v366_v36 = vadd.f32 %v364_v35, %v356_v34 }
 0x27b   :  { %2778 = vtanh.f32 %v366_v36  ;;  %v380_v55 = vsel %vm378_vm3, %v366_v36, 0.0 }
 0x27c   :  { %v468_v56 = vrot.slane %v380_v55, 6 }
 0x285   :  { %v2779_v37 = vpop.eup %2778 }
 0x286   :  { %369 = vrot.lane.b32.xlu1 %v2779_v37, %s3064_s27 }
 0x2f8   :  { %v370_v39 = vpop.permute.xlu1 %369 }
 0x2f9   :  { %v372_v40 = vmul.f32 %v2777_v31, %v370_v39 }
 0x2fb   :  { %v379_v41 = vsel %vm378_vm3, %v372_v40, 0.0  ;;  %vm1364_vm3 = vcmask 523264  }
 0x2fc   :  { %382 = vrot.lane.b32.xlu0 %v379_v41, %s3065_s22 }
 0x36e   :  { %v383_v42 = vpop.permute.xlu0 %382 }
 0x36f   :  { %2472 = vmatmul.mubr.msk.f32.vlgmr.msra.gmra.mrb[2].mxu0 %vm188_vm1, %v383_v42 }
 0x370   :  { %2664 = vmatpush3.bf16.msra.mxu0 %v3345_v9  ;;  %2493 = vmatprep.mubr.msk.f32.mxu0 %vm3061_vm0, %v3062_v1 }
 0x371   :  { %2665 = vmatprep.subr.bf16.mxu0 %v3060_v0 }
 0x374   :  { %2667 = vmatpush3.bf16.msra.mxu0 %v3358_v14 }
 0x375   :  { %2674 = vmatprep.subr.bf16.mxu0 %v3060_v0 }
 0x442   :  { %v452_v43 = vpop.f32.mrb[2].mxu0 }
 0x443   :  { %v457_v44 = vrot.slane %v452_v43, 6  ;;  %v2473_v45 = vpop.f32.mrb[3].mxu0 }
 0x445   :  { %v459_v46 = vadd.f32 %v457_v44, %v3395_v25 }
 0x447   :  { %2780 = vtanh.f32 %v459_v46  ;;  %v2314_v48 = vmul.f32 -1.442695, %v459_v46 }
 0x449   :  { %2782 = vpow2.f32 %v2314_v48 }
 0x451   :  { %v2781_v47 = vpop.eup %2780 }
 0x452   :  { %472 = vrot.lane.b32.xlu1 %v2781_v47, %s3064_s27 }
 0x453   :  { %v2783_v49 = vpop.eup %2782 }
 0x454   :  { %v463_v50 = vadd.f32 1.0, %v2783_v49 }
 0x456   :  { %2784 = vrcp.f32 %v463_v50 }
 0x460   :  { %v2785_v51 = vpop.eup %2784 }
 0x461   :  { %v470_v57 = vmul.f32 %v2785_v51, %v468_v56 }
 0x4c4   :  { %v473_v52 = vpop.permute.xlu1 %472 }
 0x4c5   :  { %v475_v53 = vmul.f32 %v2785_v51, %v473_v52 }
 0x4c7   :  { %477 = vrot.lane.b32.xlu0 %v475_v53, %s3065_s22 }
 0x4cb   :  { %490 = vperm.xlu0 %2771, %v488_v54   ;;  %v740_v54 = vsel %vm2321_vm8, 1, %v3063_v17 }
 0x4cf   :  { %505 = vrot.lane.b32.xlu0 %v380_v55, %s3066_s15 }
 0x539   :  { %v478_v58 = vpop.permute.xlu0 %477 }
 0x53a   :  { %v480_v59 = vadd.f32 %v478_v58, %v470_v57 }
 0x53c   :  { %2786 = vtanh.f32 %v480_v59  ;;  %v501_v2 = vrot.slane %v480_v59, 2 }
 0x546   :  { %v2787_v60 = vpop.eup %2786 }
 0x547   :  { %483 = vrot.lane.b32.xlu1 %v2787_v60, %s3064_s27 }
 0x54a   :  { %v491_v3 = vpop.permute.xlu0 %490 }
 0x54b   :  { %vm492_vm5 = vcmp.eq.s32.totalorder %v491_v3, 1 }
 0x54e   :  { %v506_v6 = vpop.permute.xlu0 %505 }
 0x5b9   :  { %v484_v61 = vpop.permute.xlu1 %483 }
 0x5ba   :  { %v486_v62 = vmul.f32 %v2785_v51, %v484_v61 }
 0x5bc   :  { %v494_v63 = vrot.slane %v486_v62, 2 }
 0x5be   :  { %495 = vrot.lane.b32.xlu1 %v494_v63, %s3065_s22  ;;  %v860_v63 = vsel %vm2324_vm10, 1, %v3063_v17 }
 0x5c2   :  { %502 = vrot.lane.b32.xlu1 %v501_v2, %s3066_s15 }
 0x630   :  { %v496_v4 = vpop.permute.xlu1 %495 }
 0x631   :  { %v499_v5 = vsel %vm492_vm5, %v496_v4, %v383_v42 }
 0x632   :  { %2483 = vmatmul.mubr.msk.f32.vlgmr.msra.gmra.mrb[2].mxu1 %vm188_vm1, %v499_v5 }
 0x633   :  { %2670 = vmatpush3.bf16.msra.mxu1 %v3345_v9  ;;  %2504 = vmatprep.mubr.msk.f32.mxu1 %vm3061_vm0, %v3062_v1 }
 0x634   :  { %v503_v7 = vpop.permute.xlu1 %502  ;;  %2671 = vmatprep.subr.bf16.mxu1 %v3060_v0 }
 0x635   :  { %v508_v8 = vsel %vm492_vm5, %v503_v7, %v506_v6  ;;  %vm1601_vm5 = vcmask 1041409  }
 0x636   :  { %v594_v10 = vrot.slane %v508_v8, 4 }
 0x637   :  { %2673 = vmatpush3.bf16.msra.mxu1 %v3358_v14 }
 0x638   :  { %595 = vrot.lane.b32.xlu0 %v594_v10, %s3065_s22  ;;  %2680 = vmatprep.subr.bf16.mxu1 %v3060_v0 }
 0x6aa   :  { %v596_v28 = vpop.permute.xlu0 %595 }
 0x705   :  { %v578_v11 = vpop.f32.mrb[2].mxu1 }
 0x706   :  { %v583_v12 = vrot.slane %v578_v11, 4  ;;  %v2484_v13 = vpop.f32.mrb[3].mxu1 }
 0x708   :  { %v585_v15 = vadd.f32 %v583_v12, %v3395_v25 }
 0x70a   :  { %2788 = vtanh.f32 %v585_v15  ;;  %v2317_v19 = vmul.f32 -1.442695, %v585_v15 }
 0x70c   :  { %2790 = vpow2.f32 %v2317_v19 }
 0x714   :  { %v2789_v18 = vpop.eup %2788 }
 0x715   :  { %600 = vrot.lane.b32.xlu1 %v2789_v18, %s3064_s27 }
 0x716   :  { %v2791_v20 = vpop.eup %2790 }
 0x717   :  { %v589_v21 = vadd.f32 1.0, %v2791_v20 }
 0x719   :  { %2792 = vrcp.f32 %v589_v21 }
 0x723   :  { %v2793_v23 = vpop.eup %2792 }
 0x724   :  { %v598_v29 = vmul.f32 %v2793_v23, %v596_v28 }
 0x787   :  { %v601_v24 = vpop.permute.xlu1 %600 }
 0x788   :  { %v603_v26 = vmul.f32 %v2793_v23, %v601_v24 }
 0x78a   :  { %605 = vrot.lane.b32.xlu1 %v603_v26, %s3065_s22 }
 0x78e   :  { %618 = vperm.xlu1 %2770, %v616_v27  }
 0x7fc   :  { %v606_v30 = vpop.permute.xlu1 %605 }
 0x7fd   :  { %v608_v31 = vadd.f32 %v606_v30, %v598_v29 }
 0x7ff   :  { %2794 = vtanh.f32 %v608_v31  ;;  %v628_v32 = vrot.slane %v608_v31, 4 }
 0x801   :  { %629 = vrot.lane.b32.xlu1 %v628_v32, %s3066_s15 }
 0x809   :  { %v2795_v33 = vpop.eup %2794 }
 0x80a   :  { %611 = vrot.lane.b32.xlu0 %v2795_v33, %s3064_s27 }
 0x80d   :  { %v619_v34 = vpop.permute.xlu1 %618 }
 0x80e   :  { %vm620_vm7 = vcmp.eq.s32.totalorder %v619_v34, 1 }
 0x873   :  { %v630_v35 = vpop.permute.xlu1 %629 }
 0x874   :  { %v632_v36 = vsel %vm620_vm7, %v630_v35, %v508_v8 }
 0x875   :  { %v718_v37 = vrot.slane %v632_v36, 2 }
 0x877   :  { %719 = vrot.lane.b32.xlu1 %v718_v37, %s3065_s22 }
 0x87c   :  { %v612_v38 = vpop.permute.xlu0 %611 }
 0x87d   :  { %v614_v39 = vmul.f32 %v2793_v23, %v612_v38 }
 0x87f   :  { %v622_v40 = vrot.slane %v614_v39, 4 }
 0x881   :  { %623 = vrot.lane.b32.xlu0 %v622_v40, %s3065_s22 }
 0x8f3   :  { %v624_v41 = vpop.permute.xlu0 %623 }
 0x8f4   :  { %v626_v42 = vsel %vm620_vm7, %v624_v41, %v499_v5 }
 0x8f5   :  { %2494 = vmatmul.mubr.msk.f32.vlgmr.msra.gmra.mrb[4].mxu0 %vm188_vm1, %v626_v42 }
 0x8f6   :  { %2676 = vmatpush3.bf16.msra.mxu0 %v3345_v9  ;;  %2515 = vmatprep.mubr.msk.f32.mxu0 %vm3061_vm0, %v3062_v1 }
 0x8f7   :  { %2677 = vmatprep.subr.bf16.mxu0 %v3060_v0 }
 0x8fa   :  { %2679 = vmatpush3.bf16.msra.mxu0 %v3358_v14 }
 0x8fb   :  { %2686 = vmatprep.subr.bf16.mxu0 %v3060_v0 }
 0x9c8   :  { %v702_v43 = vpop.f32.mrb[4].mxu0 }
 0x9c9   :  { %v707_v44 = vrot.slane %v702_v43, 2  ;;  %v2495_v45 = vpop.f32.mrb[5].mxu0 }
 0x9cb   :  { %v709_v46 = vadd.f32 %v707_v44, %v3395_v25  ;;  %v720_v25 = vpop.permute.xlu1 %719 }
 0x9cd   :  { %2796 = vtanh.f32 %v709_v46  ;;  %v2320_v48 = vmul.f32 -1.442695, %v709_v46 }
 0x9cf   :  { %2798 = vpow2.f32 %v2320_v48 }
 0x9d7   :  { %v2797_v47 = vpop.eup %2796 }
 0x9d8   :  { %724 = vrot.lane.b32.xlu0 %v2797_v47, %s3064_s27 }
 0x9d9   :  { %v2799_v49 = vpop.eup %2798 }
 0x9da   :  { %v713_v50 = vadd.f32 1.0, %v2799_v49 }
 0x9dc   :  { %2800 = vrcp.f32 %v713_v50 }
 0x9e6   :  { %v2801_v51 = vpop.eup %2800 }
 0x9e7   :  { %v722_v55 = vmul.f32 %v2801_v51, %v720_v25 }
 0xa4a   :  { %v725_v52 = vpop.permute.xlu0 %724 }
 0xa4b   :  { %v727_v53 = vmul.f32 %v2801_v51, %v725_v52 }
 0xa4d   :  { %729 = vrot.lane.b32.xlu0 %v727_v53, %s3065_s22 }
 0xa51   :  { %742 = vperm.xlu0 %2771, %v740_v54  }
 0xabf   :  { %v730_v56 = vpop.permute.xlu0 %729 }
 0xac0   :  { %v732_v57 = vadd.f32 %v730_v56, %v722_v55 }
 0xac2   :  { %2802 = vtanh.f32 %v732_v57  ;;  %v752_v58 = vrot.slane %v732_v57, 6 }
 0xac4   :  { %753 = vrot.lane.b32.xlu0 %v752_v58, %s3066_s15 }
 0xacc   :  { %v2803_v59 = vpop.eup %2802 }
 0xacd   :  { %735 = vrot.lane.b32.xlu1 %v2803_v59, %s3064_s27 }
 0xad0   :  { %v743_v60 = vpop.permute.xlu0 %742 }
 0xad1   :  { %vm744_vm9 = vcmp.eq.s32.totalorder %v743_v60, 1 }
 0xb36   :  { %v754_v61 = vpop.permute.xlu0 %753 }
 0xb37   :  { %v756_v62 = vsel %vm744_vm9, %v754_v61, %v632_v36 }
 0xb38   :  { %839 = vrot.lane.b32.xlu0 %v756_v62, %s3065_s22 }
 0xb3c   :  { %862 = vperm.xlu0 %2771, %v860_v63  }
 0xb3f   :  { %v736_v2 = vpop.permute.xlu1 %735 }
 0xb40   :  { %v738_v3 = vmul.f32 %v2801_v51, %v736_v2 }
 0xb42   :  { %v746_v4 = vrot.slane %v738_v3, 6 }
 0xb44   :  { %747 = vrot.lane.b32.xlu1 %v746_v4, %s3065_s22 }
 0xbaa   :  { %v840_v21 = vpop.permute.xlu0 %839 }
 0xbb6   :  { %v748_v5 = vpop.permute.xlu1 %747 }
 0xbb7   :  { %v750_v6 = vsel %vm744_vm9, %v748_v5, %v626_v42 }
 0xbb8   :  { %865 = vrot.lane.b32.xlu0 %v750_v6, %s3066_s15  ;;  %2505 = vmatmul.mubr.msk.f32.vlgmr.msra.gmra.mrb[4].mxu1 %vm188_vm1, %v750_v6 }
 0xbb9   :  { %2682 = vmatpush3.bf16.msra.mxu1 %v3345_v9  ;;  %2526 = vmatprep.mubr.msk.f32.mxu1 %vm3061_vm0, %v3062_v1 }
 0xbba   :  { %2683 = vmatprep.subr.bf16.mxu1 %v3060_v0 }
 0xbbb   :  { %v863_v28 = vpop.permute.xlu0 %862 }
 0xbbc   :  { %vm864_vm11 = vcmp.eq.s32.totalorder %v863_v28, 1 }
 0xbbd   :  { %2685 = vmatpush3.bf16.msra.mxu1 %v3358_v14 }
 0xc2a   :  { %v866_v31 = vpop.permute.xlu0 %865 }
 0xc8b   :  { %v826_v7 = vpop.f32.mrb[4].mxu1 }
 0xc8c   :  { %v830_v8 = vadd.f32 %v826_v7, %v3393_v22  ;;  %v2506_v10 = vpop.f32.mrb[5].mxu1 }
 0xc8d   :  { %v1105_v10 = vsel %vm2330_vm14, 1, %v3063_v17 }
 0xc8e   :  { %2804 = vtanh.f32 %v830_v8  ;;  %v2323_v12 = vmul.f32 -1.442695, %v830_v8 }
 0xc90   :  { %2806 = vpow2.f32 %v2323_v12 }
 0xc98   :  { %v2805_v11 = vpop.eup %2804 }
 0xc99   :  { %844 = vrot.lane.b32.xlu1 %v2805_v11, %s3064_s27 }
 0xc9a   :  { %v2807_v13 = vpop.eup %2806 }
 0xc9b   :  { %v834_v15 = vadd.f32 1.0, %v2807_v13 }
 0xc9d   :  { %2808 = vrcp.f32 %v834_v15 }
 0xca7   :  { %v2809_v18 = vpop.eup %2808 }
 0xca8   :  { %v842_v23 = vmul.f32 %v2809_v18, %v840_v21 }
 0xd0b   :  { %v845_v19 = vpop.permute.xlu1 %844 }
 0xd0c   :  { %v847_v20 = vmul.f32 %v2809_v18, %v845_v19 }
 0xd0e   :  { %849 = vrot.lane.b32.xlu1 %v847_v20, %s3065_s22 }
 0xd80   :  { %v850_v24 = vpop.permute.xlu1 %849 }
 0xd81   :  { %v852_v26 = vadd.f32 %v850_v24, %v842_v23 }
 0xd83   :  { %2810 = vtanh.f32 %v852_v26  ;;  %v869_v44 = vsel %vm864_vm11, %v852_v26, %v840_v21 }
 0xd84   :  { %v957_v45 = vrot.slane %v869_v44, 6 }
 0xd8d   :  { %v2811_v27 = vpop.eup %2810 }
 0xd8e   :  { %855 = vrot.lane.b32.xlu1 %v2811_v27, %s3064_s27 }
 0xe00   :  { %v856_v29 = vpop.permute.xlu1 %855 }
 0xe01   :  { %v858_v30 = vmul.f32 %v2809_v18, %v856_v29 }
 0xe03   :  { %v868_v32 = vsel %vm864_vm11, %v858_v30, %v866_v31 }
 0xe04   :  { %871 = vrot.lane.b32.xlu1 %v868_v32, %s3065_s22 }
 0xe76   :  { %v872_v33 = vpop.permute.xlu1 %871 }
 0xe77   :  { %2516 = vmatmul.mubr.msk.f32.vlgmr.msra.gmra.mrb[6].mxu0 %vm188_vm1, %v872_v33 }
 0xe78   :  { %2688 = vmatpush3.bf16.msra.mxu0 %v3345_v9  ;;  %2537 = vmatprep.mubr.msk.f32.mxu0 %vm3061_vm0, %v3062_v1 }
 0xe79   :  { %2689 = vmatprep.subr.bf16.mxu0 %v3060_v0 }
 0xe7c   :  { %2691 = vmatpush3.bf16.msra.mxu0 %v3358_v14  ;;  %v977_v14 = vsel %vm2327_vm12, 1, %v3063_v17 }
 0xf4a   :  { %v941_v34 = vpop.f32.mrb[6].mxu0 }
 0xf4b   :  { %v946_v35 = vrot.slane %v941_v34, 6  ;;  %v2517_v36 = vpop.f32.mrb[7].mxu0 }
 0xf4c   :  { %v1253_v36 = vld [vmem:[%s3738_s8 + $0x8] sm:$0xff] }
 0xf4d   :  { %v948_v37 = vadd.f32 %v946_v35, %v3393_v22  ;;  %v1252_v35 = vld [vmem:[%s3738_s8] sm:$0xff] }
 0xf4f   :  { %2812 = vtanh.f32 %v948_v37  ;;  %v2326_v39 = vmul.f32 -1.442695, %v948_v37  ;;  %v1254_v37 = vld [vmem:[%s3738_s8 + $0x10] sm:$0xff] }
 0xf51   :  { %2814 = vpow2.f32 %v2326_v39  ;;  %v1255_v39 = vld [vmem:[%s3738_s8 + $0x18] sm:$0xff] }
 0xf59   :  { %v2813_v38 = vpop.eup %2812 }
 0xf5a   :  { %961 = vrot.lane.b32.xlu0 %v2813_v38, %s3064_s27  ;;  %v2692_v38 = vpack.c.bf16 %v1253_v36, %v1252_v35  ;;  %v3067_v35 = vmov 1966171168  }
 0xf5b   :  { %v2815_v40 = vpop.eup %2814  ;;  %v1525_v36 = vunpack.c.l.s4 %v3067_v35 }
 0xf5c   :  { %v952_v9 = vadd.f32 1.0, %v2815_v40  ;;  %v3515_v40 = vld [vmem:[#allocation2] sm:$0xff]  ;;  %2693 = vmatprep.subr.bf16.mxu1 %v2692_v38 }
 0xf5e   :  { %2816 = vrcp.f32 %v952_v9  ;;  %v2696_v9 = vpack.c.bf16 %v1255_v39, %v1254_v37  ;;  %v1527_v37 = vlaneseq }
 0xf60   :  { %v3602_v39 = vshrl.u32 %v1527_v37, 7 }
 0xf68   :  { %v2817_v41 = vpop.eup %2816 }
 0xf69   :  { %v959_v46 = vmul.f32 %v2817_v41, %v957_v45 }
 0xfcc   :  { %v962_v42 = vpop.permute.xlu0 %961 }
 0xfcd   :  { %v964_v43 = vmul.f32 %v2817_v41, %v962_v42  ;;  %v3519_v42 = vld [vmem:[#allocation2 + $0x8] sm:$0xff] }
 0xfcf   :  { %966 = vrot.lane.b32.xlu1 %v964_v43, %s3065_s22  ;;  %v1249_v43 = vld [vmem:[#allocation4 + $0x8] sm:$0xff] }
 0xfd3   :  { %979 = vperm.xlu1 %2770, %v977_v14  }
0x1041   :  { %v967_v47 = vpop.permute.xlu1 %966 }
0x1042   :  { %v969_v48 = vadd.f32 %v967_v47, %v959_v46 }
0x1044   :  { %2818 = vtanh.f32 %v969_v48  ;;  %v990_v49 = vrot.slane %v969_v48, 2 }
0x1046   :  { %991 = vrot.lane.b32.xlu1 %v990_v49, %s3066_s15 }
0x104e   :  { %v2819_v50 = vpop.eup %2818 }
0x104f   :  { %972 = vrot.lane.b32.xlu0 %v2819_v50, %s3064_s27 }
0x1052   :  { %v980_v54 = vpop.permute.xlu1 %979 }
0x1053   :  { %vm981_vm13 = vcmp.eq.s32.totalorder %v980_v54, 1 }
0x10b8   :  { %v992_v56 = vpop.permute.xlu1 %991 }
0x10c1   :  { %v973_v51 = vpop.permute.xlu0 %972 }
0x10c2   :  { %v975_v52 = vmul.f32 %v2817_v41, %v973_v51  ;;  %v1229_v51 = vsel %vm2333_vm2, 1, %v3063_v17  ;;  %v1356_v17 = vld [vmem:[%s3740_s10] sm:$0xff] }
0x10c4   :  { %v983_v53 = vrot.slane %v975_v52, 2  ;;  %v2334_v52 = vld [vmem:[%s3739_s9] ss:$0 sm:$0xff] }
0x10c6   :  { %984 = vrot.lane.b32.xlu0 %v983_v53, %s3065_s22 }
0x10ca   :  { %994 = vrot.lane.b32.xlu0 %v869_v44, %s3066_s15  ;;  %v1251_v44 = vsub.f32 %v3519_v42, %v1249_v43 }
0x1138   :  { %v985_v25 = vpop.permute.xlu0 %984 }
0x1139   :  { %v988_v55 = vsel %vm981_vm13, %v985_v25, %v872_v33 }
0x113a   :  { %2527 = vmatmul.mubr.msk.f32.vlgmr.msra.gmra.mrb[6].mxu1 %vm188_vm1, %v988_v55 }
0x113b   :  { %2695 = vmatpush3.bf16.msra.mxu1 %v2692_v38  ;;  %v1526_v38 = vunpack.c.0.s8 %v1525_v36 }
0x113c   :  { %v995_v57 = vpop.permute.xlu0 %994  ;;  %2697 = vmatprep.subr.bf16.mxu1 %v2696_v9 }
0x113d   :  { %v997_v58 = vsel %vm981_vm13, %v992_v56, %v995_v57 }
0x113e   :  { %v1083_v59 = vrot.slane %v997_v58, 4 }
0x113f   :  { %2699 = vmatpush3.bf16.msra.mxu1 %v2696_v9 }
0x1140   :  { %1084 = vrot.lane.b32.xlu0 %v1083_v59, %s3065_s22  ;;  %2716 = vmatprep.subr.bf16.mxu1 %v3060_v0 }
0x11b2   :  { %v1085_v11 = vpop.permute.xlu0 %1084 }
0x120d   :  { %v1067_v60 = vpop.f32.mrb[6].mxu1 }
0x120e   :  { %v1072_v61 = vrot.slane %v1067_v60, 4  ;;  %v2528_v62 = vpop.f32.mrb[7].mxu1  ;;  %v1357_v60 = vld [vmem:[%s3740_s10 + $0x8] sm:$0xff] }
0x120f   :  { %v2700_v62 = vpack.c.bf16 %v1357_v60, %v1356_v17 }
0x1210   :  { %v1074_v63 = vadd.f32 %v1072_v61, %v3393_v22  ;;  %v1358_v61 = vld [vmem:[%s3740_s10 + $0x10] sm:$0xff] }
0x1211   :  { %2701 = vmatprep.subr.bf16.mxu0 %v2700_v62 }
0x1212   :  { %2820 = vtanh.f32 %v1074_v63  ;;  %v2329_v3 = vmul.f32 -1.442695, %v1074_v63  ;;  %v1359_v63 = vld [vmem:[%s3740_s10 + $0x18] sm:$0xff] }
0x1214   :  { %2822 = vpow2.f32 %v2329_v3  ;;  %v1447_v3 = vld [vmem:[%s3741_s11 + $0x8] sm:$0xff] }
0x121c   :  { %v2821_v2 = vpop.eup %2820 }
0x121d   :  { %1089 = vrot.lane.b32.xlu1 %v2821_v2, %s3064_s27  ;;  %v1446_v2 = vld [vmem:[%s3741_s11] sm:$0xff] }
0x121e   :  { %v2823_v4 = vpop.eup %2822 }
0x121f   :  { %v1078_v5 = vadd.f32 1.0, %v2823_v4  ;;  %v2704_v4 = vpack.c.bf16 %v1359_v63, %v1358_v61  ;;  %v3620_v63 = vld [vmem:[#allocation6 + $0x8] sm:$0xff] }
0x1221   :  { %2824 = vrcp.f32 %v1078_v5  ;;  %v2717_v5 = vpack.c.bf16 %v1447_v3, %v1446_v2 }
0x122b   :  { %v2825_v6 = vpop.eup %2824 }
0x122c   :  { %v1087_v12 = vmul.f32 %v2825_v6, %v1085_v11 }
0x128f   :  { %v1090_v7 = vpop.permute.xlu1 %1089 }
0x1290   :  { %v1092_v8 = vmul.f32 %v2825_v6, %v1090_v7  ;;  %v1361_v7 = vld [vmem:[%s3740_s10 + $0x28] sm:$0xff] }
0x1292   :  { %1094 = vrot.lane.b32.xlu1 %v1092_v8, %s3065_s22  ;;  %v1448_v8 = vld [vmem:[%s3741_s11 + $0x10] sm:$0xff] }
0x1296   :  { %1107 = vperm.xlu1 %2770, %v1105_v10   ;;  %v1449_v10 = vld [vmem:[%s3741_s11 + $0x18] sm:$0xff] }
0x1304   :  { %v1095_v13 = vpop.permute.xlu1 %1094 }
0x1305   :  { %v1097_v15 = vadd.f32 %v1095_v13, %v1087_v12  ;;  %v2720_v12 = vpack.c.bf16 %v1449_v10, %v1448_v8 }
0x1307   :  { %2826 = vtanh.f32 %v1097_v15  ;;  %v1117_v18 = vrot.slane %v1097_v15, 4 }
0x1309   :  { %1118 = vrot.lane.b32.xlu1 %v1117_v18, %s3066_s15  ;;  %v1362_v18 = vld [vmem:[%s3740_s10 + $0x30] sm:$0xff] }
0x1311   :  { %v2827_v19 = vpop.eup %2826 }
0x1312   :  { %1100 = vrot.lane.b32.xlu0 %v2827_v19, %s3064_s27  ;;  %v1363_v19 = vld [vmem:[%s3740_s10 + $0x38] sm:$0xff] }
0x1315   :  { %v1108_v20 = vpop.permute.xlu1 %1107 }
0x1316   :  { %vm1109_vm15 = vcmp.eq.s32.totalorder %v1108_v20, 1  ;;  %v2712_v20 = vpack.c.bf16 %v1363_v19, %v1362_v18 }
0x137b   :  { %v1119_v21 = vpop.permute.xlu1 %1118 }
0x137c   :  { %v3493_v23 = vsel %vm1109_vm15, %v1119_v21, %v997_v58 }
0x137d   :  { %v1207_v24 = vrot.slane %v3493_v23, 2 }
0x137f   :  { %1208 = vrot.lane.b32.xlu1 %v1207_v24, %s3065_s22 }
0x1384   :  { %v1101_v26 = vpop.permute.xlu0 %1100 }
0x1385   :  { %v1103_v27 = vmul.f32 %v2825_v6, %v1101_v26  ;;  %v1360_v6 = vld [vmem:[%s3740_s10 + $0x20] sm:$0xff] }
0x1386   :  { %v2708_v13 = vpack.c.bf16 %v1361_v7, %v1360_v6  ;;  %v1592_v7 = vand.u32 127, %v1527_v37  ;;  %v3643_v37 = vsub.s32 1, %v3602_v39 }
0x1387   :  { %v1111_v28 = vrot.slane %v1103_v27, 4 }
0x1388   :  { %v3628_v8 = vsub.s32 %v1592_v7, %v3602_v39 }
0x1389   :  { %1112 = vrot.lane.b32.xlu0 %v1111_v28, %s3065_s22 }
0x13f1   :  { %v1209_v57 = vpop.permute.xlu1 %1208 }
0x13fb   :  { %v1113_v29 = vpop.permute.xlu0 %1112 }
0x13fc   :  { %v3498_v30 = vsel %vm1109_vm15, %v1113_v29, %v988_v55 }
0x13fd   :  { %2538 = vmatmul.mubr.msk.f32.vlgmr.msra.gmra.mrb[8].mxu0 %vm188_vm1, %v3498_v30 }
0x13fe   :  { %2703 = vmatpush3.bf16.msra.mxu0 %v2700_v62 }
0x13ff   :  { %2705 = vmatprep.subr.bf16.mxu0 %v2704_v4 }
0x1402   :  { %2707 = vmatpush3.bf16.msra.mxu0 %v2704_v4 }
0x1403   :  { %2709 = vmatprep.subr.bf16.mxu0 %v2708_v13 }
0x1406   :  { %2711 = vmatpush3.bf16.msra.mxu0 %v2708_v13 }
0x1407   :  { %2713 = vmatprep.subr.bf16.mxu0 %v2712_v20 }
0x140a   :  { %2715 = vmatpush3.bf16.msra.mxu0 %v2712_v20 }
0x140b   :  { %2728 = vmatprep.subr.bf16.mxu0 %v3060_v0 }
0x14d0   :  { %v1191_v31 = vpop.f32.mrb[8].mxu0 }
0x14d1   :  { %v1196_v32 = vrot.slane %v1191_v31, 2  ;;  %v2539_v33 = vpop.f32.mrb[9].mxu0 }
0x14d3   :  { %v1198_v34 = vadd.f32 %v1196_v32, %v3393_v22  ;;  %v1248_v22 = vld [vmem:[#allocation4] sm:$0xff] }
0x14d4   :  { %v1250_v41 = vsub.f32 %v3515_v40, %v1248_v22 }
0x14d5   :  { %2828 = vtanh.f32 %v1198_v34  ;;  %v2332_v45 = vmul.f32 -1.442695, %v1198_v34 }
0x14d6   :  { %2548 = vmatprep.mubr.msk.f32.mxu1 %vm188_vm1, %v1250_v41  ;;  %v3606_v41 = vsub.s32 0, %v3602_v39 }
0x14d7   :  { %2549 = vmatmul.mubr.msk.f32.vlgmr.msra.gmra.mrb[8].mxu1 %vm188_vm1, %v1251_v44  ;;  %2830 = vpow2.f32 %v2332_v45 }
0x14d8   :  { %2578 = vmatprep.mubr.msk.f32.mxu1 %vm3061_vm0, %v3062_v1  ;;  %2718 = vmatpush3.bf16.msra.mxu1 %v2717_v5 }
0x14d9   :  { %2719 = vmatprep.subr.bf16.mxu1 %v3060_v0 }
0x14dc   :  { %2721 = vmatpush3.bf16.msra.mxu1 %v2720_v12 }
0x14dd   :  { %2722 = vmatprep.subr.bf16.mxu1 %v3060_v0 }
0x14df   :  { %v2829_v14 = vpop.eup %2828 }
0x14e0   :  { %1213 = vrot.lane.b32.xlu0 %v2829_v14, %s3064_s27 }
0x14e1   :  { %v2831_v46 = vpop.eup %2830 }
0x14e2   :  { %v1202_v47 = vadd.f32 1.0, %v2831_v46 }
0x14e4   :  { %2832 = vrcp.f32 %v1202_v47 }
0x14ee   :  { %v2833_v48 = vpop.eup %2832 }
0x14ef   :  { %v1211_v58 = vmul.f32 %v2833_v48, %v1209_v57  ;;  %v3615_v57 = vld [vmem:[#allocation6] sm:$0xff] }
0x1552   :  { %v1214_v49 = vpop.permute.xlu0 %1213 }
0x1553   :  { %v1216_v50 = vmul.f32 %v2833_v48, %v1214_v49 }
0x1555   :  { %1218 = vrot.lane.b32.xlu0 %v1216_v50, %s3065_s22 }
0x1559   :  { %1231 = vperm.xlu0 %2771, %v1229_v51  }
0x15aa   :  { %v2550_v53 = vpop.f32.mrb[8].mxu1 }
0x15ab   :  { %v1341_v54 = vadd.f32 %v2550_v53, %v2334_v52  ;;  %v1335_v25 = vpop.f32.mrb[9].mxu1 }
0x15ac   :  { %v1336_v55 = vadd.f32 %v2334_v52, %v1335_v25  ;;  %v2340_v52 = vld [vmem:[%s3742_s12] ss:$0 sm:$0xff] }
0x15ae   :  { %2834 = vtanh.f32 %v1336_v55 }
0x15b8   :  { %v3533_v56 = vpop.eup %2834 }
0x15b9   :  { %1348 = vrot.lane.b32.xlu0 %v3533_v56, %s3065_s22 }
0x15c7   :  { %v1219_v16 = vpop.permute.xlu0 %1218 }
0x15c8   :  { %v3537_v59 = vadd.f32 %v1219_v16, %v1211_v58  ;;  %v2341_v58 = vld [vmem:[#allocation7] ss:$0 sm:$0xff] }
0x15c9   :  { %v1788_v60 = vmul.f32 %v2341_v58, %v3615_v57  ;;  %v1789_v4 = vmul.f32 %v2341_v58, %v3620_v63 }
0x15ca   :  { %2836 = vtanh.f32 %v3537_v59 }
0x15cb   :  { %2838 = vtanh.f32 %v1341_v54  ;;  %v1790_v3 = vsel %vm188_vm1, %v1788_v60, 0.0  ;;  %v1793_v6 = vsel %vm188_vm1, %v1789_v4, 0.0 }
0x15d4   :  { %v2837_v11 = vpop.eup %2836 }
0x15d5   :  { %1224 = vrot.lane.b32.xlu1 %v2837_v11, %s3064_s27  ;;  %v3586_v29 = vpop.eup %2838 }
0x15d8   :  { %v3573_v15 = vpop.permute.xlu0 %1231 }
0x15d9   :  { %vm1233_vm4 = vcmp.eq.s32.totalorder %v3573_v15, 1 }
0x162b   :  { %v1349_v21 = vpop.permute.xlu0 %1348 }
0x162c   :  { %v1354_v24 = vsel %vm188_vm1, %v3515_v40, %v1349_v21 }
0x162d   :  { %2567 = vmatprep.mubr.msk.f32.mxu0 %vm1364_vm3, %v1354_v24 }
0x1647   :  { %v1225_v26 = vpop.permute.xlu1 %1224 }
0x1648   :  { %v1227_v27 = vmul.f32 %v2833_v48, %v1225_v26 }
0x164a   :  { %v1235_v28 = vrot.slane %v1227_v27, 6 }
0x164c   :  { %1236 = vrot.lane.b32.xlu1 %v1235_v28, %s3065_s22 }
0x1650   :  { %1350 = vrot.lane.b32.xlu1 %v3586_v29, %s3065_s22 }
0x16be   :  { %v1237_v31 = vpop.permute.xlu1 %1236 }
0x16bf   :  { %v1239_v32 = vsel %vm1233_vm4, %v1237_v31, %v3498_v30  ;;  %v1529_v30 = vsub.s32 %v1526_v38, %v3602_v39 }
0x16c0   :  { %2579 = vmatmul.mubr.msk.f32.vlgmr.msra.gmra.mrb[10].mxu1 %vm188_vm1, %v1239_v32 }
0x16c1   :  { %2589 = vmatprep.mubr.msk.f32.mxu1 %vm3061_vm0, %v3062_v1 }
0x16c2   :  { %v1351_v33 = vpop.permute.xlu1 %1350 }
0x16c3   :  { %v1355_v34 = vsel %vm188_vm1, %v3519_v42, %v1351_v33 }
0x16c4   :  { %2568 = vmatmul.mubr.msk.f32.vlgmr.msra.gmra.mrb[10].mxu0 %vm1364_vm3, %v1355_v34 }
0x16c5   :  { %2600 = vmatprep.mubr.msk.f32.mxu0 %vm3061_vm0, %v3062_v1 }
0x1793   :  { %v1519_v22 = vpop.f32.mrb[10].mxu1 }
0x1794   :  { %v1530_v9 = vrot.slane %v1519_v22, %v1529_v30  ;;  %v2580_v43 = vpop.f32.mrb[11].mxu1 }
0x1796   :  { %v1531_v14 = vcombine.high %v1530_v9, %v1530_v9  ;;  %v1538_v44 = vrot.slane %v1530_v9, %v1529_v30 }
0x1797   :  { %v2569_v45 = vpop.f32.mrb[10].mxu0 }
0x1798   :  { %v1545_v46 = vrot.slane %v1531_v14, %v1529_v30  ;;  %v1437_v47 = vpop.f32.mrb[11].mxu0  ;;  %v1549_v48 = vrot.slane %v1538_v44, %v3606_v41 }
0x179a   :  { %v1553_v49 = vrot.slane %v1545_v46, %v3606_v41  ;;  %v1556_v50 = vadd.f32 %v1549_v48, %v1437_v47 }
0x179c   :  { %v1557_v51 = vadd.f32 %v2569_v45, %v1553_v49  ;;  %2840 = vtanh.f32 %v1556_v50 }
0x179e   :  { %2842 = vtanh.f32 %v1557_v51 }
0x17a6   :  { %v2841_v53 = vpop.eup %2840 }
0x17a7   :  { %v1567_v54 = vmul.f32 %v2841_v53, %v2340_v52 }
0x17a8   :  { %v2843_v25 = vpop.eup %2842 }
0x17a9   :  { %1577 = vrot.lane.b32.xlu0 %v1567_v54, %s3066_s15  ;;  %v1568_v55 = vmul.f32 %v2843_v25, %v2340_v52  ;;  %v1569_v2 = vsel %vm188_vm1, %v1567_v54, 0.0 }
0x17ab   :  { %1579 = vrot.lane.b32.xlu1 %v1568_v55, %s3066_s15  ;;  %v1572_v5 = vsel %vm188_vm1, %v1568_v55, 0.0 }
0x181b   :  { %v1578_v16 = vpop.permute.xlu0 %1577 }
0x181c   :  { %v1583_v17 = vsel %vm188_vm1, %v1578_v16, 0.0 }
0x181d   :  { %v1580_v61 = vpop.permute.xlu1 %1579  ;;  %1584 = vadd.xlane.f32.xlu0 %v1583_v17 }
0x181e   :  { %v1586_v62 = vsel %vm188_vm1, %v1580_v61, 0.0 }
0x181f   :  { %1587 = vadd.xlane.f32.xlu1 %v1586_v62 }
0x1821   :  { %1570 = vadd.xlane.f32.xlu0 %v1569_v2 }
0x1823   :  { %1791 = vadd.xlane.f32.xlu1 %v1790_v3 }
0x1825   :  { %1573 = vadd.xlane.f32.xlu0 %v1572_v5 }
0x1829   :  { %1794 = vadd.xlane.f32.xlu0 %v1793_v6 }
0x18aa   :  { %v1585_v10 = vpop.xlane.xlu0 %1584 }
0x18ab   :  { %v1665_v12 = vrot.slane %v1585_v10, %v3628_v8 }
0x18ac   :  { %v1588_v11 = vpop.xlane.xlu1 %1587 }
0x18ad   :  { %v1669_v13 = vrot.slane %v1588_v11, %v3628_v8 }
0x18ae   :  { %v1571_v18 = vpop.xlane.xlu0 %1570 }
0x18af   :  { %v1670_v19 = vsel %vm1601_vm5, %v1669_v13, %v1665_v12  ;;  %v1596_v26 = vrot.slane %v1571_v18, %v3628_v8 }
0x18b0   :  { %v1672_v20 = vsel %vm1604_vm6, %v1670_v19, -inf  ;;  %v1792_v24 = vpop.xlane.xlu1 %1791 }
0x18b1   :  { %1673 = vmax.xlane.f32.xlu1 %v1672_v20  ;;  %v1801_v28 = vrot.slane %v1792_v24, %v3628_v8 }
0x18b2   :  { %v1574_v21 = vpop.xlane.xlu0 %1573 }
0x18b3   :  { %v1600_v27 = vrot.slane %v1574_v21, %v3628_v8 }
0x18b5   :  { %v1602_v31 = vsel %vm1601_vm5, %v1600_v27, %v1596_v26 }
0x18b6   :  { %v1795_v32 = vpop.xlane.xlu0 %1794  ;;  %v1605_v33 = vsel %vm1604_vm6, %v1602_v31, -inf }
0x18b7   :  { %v1805_v34 = vrot.slane %v1795_v32, %v3628_v8  ;;  %1606 = vmax.xlane.f32.xlu0 %v1605_v33 }
0x18b9   :  { %v1806_v35 = vsel %vm1601_vm5, %v1805_v34, %v1801_v28 }
0x18ba   :  { %v1808_v36 = vsel %vm1604_vm6, %v1806_v35, -inf }
0x18bb   :  { %1809 = vmax.xlane.f32.xlu1 %v1808_v36 }
0x193e   :  { %v1674_v38 = vpop.xlane.xlu1 %1673 }
0x193f   :  { %v1679_v30 = vrot.slane %v1674_v38, %v3606_v41  ;;  %v1683_v22 = vrot.slane %v1674_v38, %v3643_v37 }
0x1941   :  { %v1686_v9 = vsub.f32 %v1585_v10, %v1679_v30  ;;  %v1687_v43 = vsub.f32 %v1588_v11, %v1683_v22 }
0x1943   :  { %v1688_v14 = vmul.f32 1.442695, %v1686_v9  ;;  %v1690_v44 = vmul.f32 1.442695, %v1687_v43 }
0x1944   :  { %v1607_v45 = vpop.xlane.xlu0 %1606 }
0x1945   :  { %2844 = vpow2.f32 %v1688_v14  ;;  %v1612_v46 = vrot.slane %v1607_v45, %v3606_v41  ;;  %v1616_v47 = vrot.slane %v1607_v45, %v3643_v37 }
0x1946   :  { %2846 = vpow2.f32 %v1690_v44 }
0x1947   :  { %v1619_v48 = vsub.f32 %v1571_v18, %v1612_v46  ;;  %v1620_v49 = vsub.f32 %v1574_v21, %v1616_v47  ;;  %v1893_v46 = vld [vmem:[#allocation9] sm:$0xff]  ;;  %v1894_v47 = vld [vmem:[#allocation9 + $0x8] sm:$0xff] }
0x1948   :  { %v1810_v39 = vpop.xlane.xlu1 %1809 }
0x1949   :  { %v1621_v50 = vmul.f32 1.442695, %v1619_v48  ;;  %v1623_v51 = vmul.f32 1.442695, %v1620_v49  ;;  %v1815_v52 = vrot.slane %v1810_v39, %v3606_v41  ;;  %v1819_v53 = vrot.slane %v1810_v39, %v3643_v37 }
0x194a   :  { %v2723_v48 = vpack.c.bf16 %v1894_v47, %v1893_v46 }
0x194b   :  { %2848 = vpow2.f32 %v1621_v50  ;;  %v1822_v54 = vsub.f32 %v1792_v24, %v1815_v52  ;;  %v1823_v25 = vsub.f32 %v1795_v32, %v1819_v53  ;;  %v1896_v52 = vld [vmem:[#allocation9 + $0x18] sm:$0xff]  ;;  %v1241_v53 = vrot.slane %v3537_v59, 6 }
0x194c   :  { %2850 = vpow2.f32 %v1623_v51  ;;  %2724 = vmatpush3.bf16.msra.mxu1 %v2723_v48  ;;  %v1895_v51 = vld [vmem:[#allocation9 + $0x10] sm:$0xff]  ;;  %v1891_v59 = vld [vmem:[%s3744_s14 + $0x10] sm:$0xff] }
0x194d   :  { %v1824_v55 = vmul.f32 1.442695, %v1822_v54  ;;  %v1826_v58 = vmul.f32 1.442695, %v1823_v25  ;;  %2725 = vmatprep.subr.bf16.mxu1 %v3060_v0  ;;  %v2726_v25 = vpack.c.bf16 %v1896_v52, %v1895_v51 }
0x194f   :  { %v2845_v16 = vpop.eup %2844  ;;  %2852 = vpow2.f32 %v1824_v55 }
0x1950   :  { %v2847_v17 = vpop.eup %2846  ;;  %2854 = vpow2.f32 %v1826_v58  ;;  %1695 = vperm.xlu0 %2771, %v2845_v16   ;;  %2727 = vmatpush3.bf16.msra.mxu1 %v2726_v25  ;;  %v1892_v58 = vld [vmem:[%s3744_s14 + $0x18] sm:$0xff] }
0x1951   :  { %1698 = vperm.xlu1 %2770, %v2847_v17   ;;  %2734 = vmatprep.subr.bf16.mxu1 %v3060_v0 }
0x1955   :  { %v2849_v60 = vpop.eup %2848 }
0x1956   :  { %v2851_v61 = vpop.eup %2850  ;;  %1628 = vperm.xlu1 %2770, %v2849_v60  }
0x1957   :  { %1631 = vperm.xlu0 %2771, %v2851_v61  }
0x1959   :  { %v2853_v62 = vpop.eup %2852 }
0x195a   :  { %v2855_v2 = vpop.eup %2854  ;;  %1831 = vperm.xlu1 %2770, %v2853_v62  }
0x195b   :  { %1834 = vperm.xlu0 %2771, %v2855_v2  }
0x19cf   :  { %v1696_v3 = vpop.permute.xlu0 %1695 }
0x19d0   :  { %v1699_v4 = vpop.permute.xlu1 %1698  ;;  %v1703_v5 = vrot.slane %v1696_v3, %v3628_v8 }
0x19d1   :  { %v1707_v6 = vrot.slane %v1699_v4, %v3628_v8 }
0x19d3   :  { %v1708_v7 = vsel %vm1601_vm5, %v1707_v6, %v1703_v5 }
0x19d4   :  { %v1710_v10 = vsel %vm1604_vm6, %v1708_v7, 0.0 }
0x19d5   :  { %1711 = vadd.xlane.f32.xlu1 %v1710_v10  ;;  %v1629_v11 = vpop.permute.xlu1 %1628 }
0x19d6   :  { %v1636_v12 = vrot.slane %v1629_v11, %v3628_v8  ;;  %v1632_v13 = vpop.permute.xlu0 %1631 }
0x19d7   :  { %v1640_v18 = vrot.slane %v1632_v13, %v3628_v8 }
0x19d9   :  { %v1832_v19 = vpop.permute.xlu1 %1831  ;;  %v1641_v20 = vsel %vm1601_vm5, %v1640_v18, %v1636_v12 }
0x19da   :  { %v1839_v21 = vrot.slane %v1832_v19, %v3628_v8  ;;  %v1835_v24 = vpop.permute.xlu0 %1834  ;;  %v1643_v26 = vsel %vm1604_vm6, %v1641_v20, 0.0 }
0x19db   :  { %v1843_v27 = vrot.slane %v1835_v24, %v3628_v8  ;;  %1644 = vadd.xlane.f32.xlu0 %v1643_v26  ;;  %v2047_v24 = vld [vmem:[#allocation10] sm:$0xff]  ;;  %v2048_v26 = vld [vmem:[#allocation10 + $0x8] sm:$0xff] }
0x19dd   :  { %v1844_v28 = vsel %vm1601_vm5, %v1843_v27, %v1839_v21 }
0x19de   :  { %v1846_v31 = vsel %vm1604_vm6, %v1844_v28, 0.0 }
0x19df   :  { %1847 = vadd.xlane.f32.xlu0 %v1846_v31 }
0x1a62   :  { %v1712_v32 = vpop.xlane.xlu1 %1711 }
0x1a63   :  { %2856 = vrcp.f32 %v1712_v32 }
0x1a68   :  { %v1645_v33 = vpop.xlane.xlu0 %1644 }
0x1a69   :  { %2858 = vrcp.f32 %v1645_v33 }
0x1a6c   :  { %v1848_v34 = vpop.xlane.xlu0 %1847 }
0x1a6d   :  { %v2857_v35 = vpop.eup %2856  ;;  %2860 = vrcp.f32 %v1848_v34 }
0x1a6e   :  { %v1718_v36 = vrot.slane %v2857_v35, %v3606_v41  ;;  %v1722_v38 = vrot.slane %v2857_v35, %v3643_v37  ;;  %v2735_v35 = vpack.c.bf16 %v2048_v26, %v2047_v24 }
0x1a70   :  { %v1725_v30 = vmul.f32 %v2845_v16, %v1718_v36  ;;  %v1726_v22 = vmul.f32 %v2847_v17, %v1722_v38  ;;  %v2732_v16 = vpack.c.bf16 %v1892_v58, %v1891_v59 }
0x1a72   :  { %1755 = vperm.xlu1 %2770, %v1725_v30   ;;  %1760 = vperm.xlu0 %2771, %v1726_v22  }
0x1a73   :  { %v2859_v8 = vpop.eup %2858 }
0x1a74   :  { %v1651_v9 = vrot.slane %v2859_v8, %v3606_v41  ;;  %v1655_v14 = vrot.slane %v2859_v8, %v3643_v37 }
0x1a76   :  { %v1658_v43 = vmul.f32 %v2849_v60, %v1651_v9  ;;  %v1659_v49 = vmul.f32 %v2851_v61, %v1655_v14  ;;  %v2049_v14 = vld [vmem:[#allocation10 + $0x10] sm:$0xff] }
0x1a77   :  { %v2861_v44 = vpop.eup %2860 }
0x1a78   :  { %1729 = vperm.xlu1 %2770, %v1658_v43   ;;  %v1854_v45 = vrot.slane %v2861_v44, %v3606_v41  ;;  %v1858_v50 = vrot.slane %v2861_v44, %v3643_v37  ;;  %v1889_v41 = vld [vmem:[%s3744_s14] sm:$0xff]  ;;  %v1890_v37 = vld [vmem:[%s3744_s14 + $0x8] sm:$0xff] }
0x1a79   :  { %v2729_v55 = vpack.c.bf16 %v1890_v37, %v1889_v41 }
0x1a7a   :  { %v1861_v39 = vmul.f32 %v2853_v62, %v1854_v45  ;;  %v1862_v54 = vmul.f32 %v2855_v2, %v1858_v50 }
0x1a7b   :  { %2730 = vmatpush3.bf16.msra.mxu0 %v2729_v55 }
0x1a7c   :  { %1734 = vperm.xlu1 %2770, %v1659_v49   ;;  %1865 = vperm.xlu0 %2771, %v1861_v39  }
0x1a7d   :  { %2731 = vmatprep.subr.bf16.mxu0 %v3060_v0 }
0x1a7f   :  { %2733 = vmatpush3.bf16.msra.mxu0 %v2732_v16 }
0x1a80   :  { %1870 = vperm.xlu1 %2770, %v1862_v54   ;;  %1242 = vrot.lane.b32.xlu0 %v1241_v53, %s3066_s15  ;;  %v2127_v53 = vld [vmem:[#allocation12] sm:$0xff]  ;;  %v2128_v54 = vld [vmem:[#allocation12 + $0x8] sm:$0xff] }
0x1a81   :  { %2740 = vmatprep.subr.bf16.mxu0 %v3060_v0  ;;  %v2741_v55 = vpack.c.bf16 %v2128_v54, %v2127_v53 }
0x1af1   :  { %v1756_v17 = vpop.permute.xlu1 %1755  ;;  %v1761_v60 = vpop.permute.xlu0 %1760 }
0x1af2   :  { %v1763_v61 = vmul.f32 %v3533_v56, %v1756_v17  ;;  %v1764_v62 = vmul.f32 %v3586_v29, %v1761_v60  ;;  %v2129_v60 = vld [vmem:[#allocation12 + $0x10] sm:$0xff] }
0x1af4   :  { %v1765_v2 = vsel %vm188_vm1, %v1763_v61, 0.0  ;;  %v1772_v3 = vsel %vm188_vm1, %v1764_v62, 0.0  ;;  %v2130_v61 = vld [vmem:[#allocation12 + $0x18] sm:$0xff] }
0x1af5   :  { %v1766_v4 = vrot.slane %v1765_v2, 4  ;;  %v1773_v5 = vrot.slane %v1772_v3, 4 }
0x1af7   :  { %v1767_v6 = vadd.f32 %v1766_v4, %v1765_v2  ;;  %v1774_v7 = vadd.f32 %v1773_v5, %v1772_v3  ;;  %v1730_v10 = vpop.permute.xlu1 %1729  ;;  %v2744_v5 = vpack.c.bf16 %v2130_v61, %v2129_v60 }
0x1af8   :  { %v1737_v11 = vmul.f32 %v1730_v10, %v3515_v40 }
0x1af9   :  { %v1768_v12 = vrot.slane %v1767_v6, 2  ;;  %v1775_v13 = vrot.slane %v1774_v7, 2 }
0x1afa   :  { %v1739_v18 = vsel %vm188_vm1, %v1737_v11, 0.0  ;;  %v2214_v11 = vld [vmem:[#allocation13] sm:$0xff] }
0x1afb   :  { %v1769_v19 = vadd.f32 %v1768_v12, %v1767_v6  ;;  %v1776_v20 = vadd.f32 %v1775_v13, %v1774_v7  ;;  %v1740_v56 = vrot.slane %v1739_v18, 4  ;;  %v1735_v21 = vpop.permute.xlu1 %1734  ;;  %v1866_v29 = vpop.permute.xlu0 %1865  ;;  %v2215_v12 = vld [vmem:[#allocation13 + $0x8] sm:$0xff]  ;;  %v2216_v13 = vld [vmem:[#allocation13 + $0x10] sm:$0xff] }
0x1afc   :  { %v1738_v27 = vmul.f32 %v1735_v21, %v3519_v42  ;;  %v1873_v28 = vmul.f32 %v1866_v29, %v3615_v57  ;;  %v2050_v42 = vld [vmem:[#allocation10 + $0x18] sm:$0xff] }
0x1afd   :  { %v1770_v31 = vrot.slane %v1769_v19, 1  ;;  %v1777_v32 = vrot.slane %v1776_v20, 1  ;;  %v1741_v33 = vadd.f32 %v1740_v56, %v1739_v18  ;;  %v2738_v39 = vpack.c.bf16 %v2050_v42, %v2049_v14 }
0x1afe   :  { %v1746_v40 = vsel %vm188_vm1, %v1738_v27, 0.0  ;;  %v1875_v34 = vsel %vm188_vm1, %v1873_v28, 0.0  ;;  %v2747_v18 = vpack.c.bf16 %v2215_v12, %v2214_v11  ;;  %v2346_v28 = vld [vmem:[%s3748_s18] ss:$0 sm:$0xff] }
0x1aff   :  { %v1771_v36 = vadd.f32 %v1770_v31, %v1769_v19  ;;  %v1778_v38 = vadd.f32 %v1777_v32, %v1776_v20  ;;  %v1742_v30 = vrot.slane %v1741_v33, 2  ;;  %v1747_v22 = vrot.slane %v1746_v40, 4  ;;  %v1871_v8 = vpop.permute.xlu1 %1870  ;;  %v1243_v7 = vpop.permute.xlu0 %1242  ;;  %v2217_v19 = vld [vmem:[#allocation13 + $0x18] sm:$0xff] }
0x1b00   :  { %v1876_v9 = vrot.slane %v1875_v34, 4  ;;  %v1874_v43 = vmul.f32 %v1871_v8, %v3620_v63  ;;  %v1245_v10 = vsel %vm1233_vm4, %v1243_v7, %v3493_v23  ;;  %v2750_v20 = vpack.c.bf16 %v2217_v19, %v2216_v13 }
0x1b01   :  { %v1743_v44 = vadd.f32 %v1742_v30, %v1741_v33  ;;  %v1748_v57 = vadd.f32 %v1747_v22, %v1746_v40  ;;  %v1899_v45 = vsel %vm1601_vm5, %v1778_v38, %v1771_v36 }
0x1b02   :  { %v1877_v46 = vadd.f32 %v1876_v9, %v1875_v34  ;;  %v1882_v47 = vsel %vm188_vm1, %v1874_v43, 0.0  ;;  %2590 = vmatmul.mubr.msk.f32.vlgmr.msra.gmra.mrb[12].mxu1 %vm188_vm1, %v1899_v45 }
0x1b03   :  { %v1749_v48 = vrot.slane %v1748_v57, 2  ;;  %v1883_v49 = vrot.slane %v1882_v47, 4  ;;  %2736 = vmatpush3.bf16.msra.mxu1 %v2735_v35  ;;  %2611 = vmatprep.mubr.msk.f32.mxu1 %vm3061_vm0, %v3062_v1  ;;  %v1744_v63 = vrot.slane %v1743_v44, 1 }
0x1b04   :  { %v1878_v50 = vrot.slane %v1877_v46, 2  ;;  %2737 = vmatprep.subr.bf16.mxu1 %v3060_v0 }
0x1b05   :  { %v1750_v51 = vadd.f32 %v1749_v48, %v1748_v57  ;;  %v1884_v52 = vadd.f32 %v1883_v49, %v1882_v47  ;;  %v1745_v59 = vadd.f32 %v1744_v63, %v1743_v44 }
0x1b06   :  { %v1879_v25 = vadd.f32 %v1878_v50, %v1877_v46 }
0x1b07   :  { %v1751_v41 = vrot.slane %v1750_v51, 1  ;;  %v1885_v37 = vrot.slane %v1884_v52, 2  ;;  %2739 = vmatpush3.bf16.msra.mxu1 %v2738_v39 }
0x1b08   :  { %2746 = vmatprep.subr.bf16.mxu1 %v3060_v0  ;;  %v1880_v16 = vrot.slane %v1879_v25, 1 }
0x1b09   :  { %v1752_v58 = vadd.f32 %v1751_v41, %v1750_v51  ;;  %v1886_v17 = vadd.f32 %v1885_v37, %v1884_v52 }
0x1b0a   :  { %v1881_v3 = vadd.f32 %v1880_v16, %v1879_v25 }
0x1b0b   :  { %v1887_v62 = vrot.slane %v1886_v17, 1  ;;  %v1974_v2 = vsel %vm1601_vm5, %v1752_v58, %v1745_v59 }
0x1b0c   :  { %2601 = vmatmul.mubr.msk.f32.vlgmr.msra.gmra.mrb[12].mxu0 %vm188_vm1, %v1974_v2 }
0x1b0d   :  { %v1888_v4 = vadd.f32 %v1887_v62, %v1886_v17  ;;  %2742 = vmatpush3.bf16.msra.mxu0 %v2741_v55  ;;  %2622 = vmatprep.mubr.msk.f32.mxu0 %vm3061_vm0, %v3062_v1 }
0x1b0e   :  { %2743 = vmatprep.subr.bf16.mxu0 %v3060_v0 }
0x1b0f   :  { %v2053_v6 = vsel %vm1601_vm5, %v1888_v4, %v1881_v3 }
0x1b10   :  { %2612 = vmatmul.mubr.msk.f32.vlgmr.msra.gmra.mrb[14].mxu1 %vm188_vm1, %v2053_v6 }
0x1b11   :  { %2745 = vmatpush3.bf16.msra.mxu0 %v2744_v5  ;;  %2633 = vmatprep.mubr.msk.f32.mxu1 %vm3061_vm0, %v3062_v1 }
0x1b12   :  { %2748 = vmatpush3.bf16.msra.mxu1 %v2747_v18 }
0x1b13   :  { %2749 = vmatprep.subr.bf16.mxu1 %v3060_v0  ;;  %v2347_v0 = vld [vmem:[%s3750_s20] ss:$0 sm:$0xff] }
0x1b14   :  { %2623 = vmatmul.mubr.msk.f32.vlgmr.msra.gmra.mrb[14].mxu0 %vm188_vm1, %v1245_v10 }
0x1b16   :  { %2751 = vmatpush3.bf16.msra.mxu1 %v2750_v20 }
0x1bd5   :  { %v1968_v56 = vpop.f32.mrb[12].mxu1 }
0x1bd6   :  { %v2591_v21 = vpop.f32.mrb[13].mxu1 }
0x1bdf   :  { %v2043_v29 = vpop.f32.mrb[12].mxu0 }
0x1be0   :  { %v2044_v1 = vadd.f32 %v2043_v29, %v1968_v56  ;;  %v2602_v24 = vpop.f32.mrb[13].mxu0 }
0x1be3   :  { %v2122_v26 = vpop.f32.mrb[14].mxu1 }
0x1be4   :  { %v2126_v15 = vadd.f32 %v2122_v26, %v2044_v1  ;;  %v2613_v23 = vpop.f32.mrb[15].mxu1 }
0x1be7   :  { %v2200_v27 = vpop.f32.mrb[14].mxu0 }
0x1be8   :  { %v2204_v31 = vadd.f32 %v2200_v27, %v2126_v15  ;;  %v2624_v32 = vpop.f32.mrb[15].mxu0 }
0x1bea   :  { %v2212_v33 = vadd.f32 %v2346_v28, %v2204_v31 }
0x1bec   :  { %2862 = vtanh.f32 %v2212_v33 }
0x1bf6   :  { %v2863_v40 = vpop.eup %2862 }
0x1bf7   :  { %2634 = vmatmul.mubr.msk.f32.vlgmr.msra.gmra.mrb[16].mxu1 %vm188_vm1, %v2863_v40 }
0x1cca   :  { %v2294_v34 = vpop.f32.mrb[16].mxu1 }
0x1ccb   :  { %v2295_v35 = vadd.f32 %v2347_v0, %v2294_v34  ;;  %v2635_v36 = vpop.f32.mrb[17].mxu1 }
0x1ccd   :  { %2298 = vst.msk [vmem:[%s3751_s21] sm:$0x3] %vm1604_vm6, %v2295_v35 }
0x1cce   :  { %2303 = vsyncpa [#allocation3], 1 }
0x1ccf   :  { %2304 = vsyncpa [#allocation5], 1 }
0x1cd0   :  { %2305 = vsyncpa [#allocation8], 1 }
0x1cd1   :  { %2306 = vsyncpa [#allocation11], 1 }
0x1cd2   :  { %2307 = vsyncpa [#allocation14], 1 }

</bundles_post_ra>
